<compile_context>
chip_gen: v5e
topology: v5e:2x2
jax: 0.10.0
libtpu: 0.0.40
codegen_flags: <defaults>
</compile_context>

<pallas_src>
import functools

import jax
import jax.numpy as jnp
from jax import lax
from jax.experimental import pallas as pl
from jax.experimental.pallas import tpu as pltpu

LANE = 128


def _round_up(n, m=LANE):
    return ((n + m - 1) // m) * m


def _const_weight_spec(shape):
    """Stage weights/biases are identical for every grid step -> request a
    single VMEM buffer instead of the default double buffer (halves constant
    operand VMEM; matters most against v7x's 64 MiB).  Falls back silently if
    this Pallas version does not expose pipeline_mode."""
    idx_map = lambda *_: (0,) * len(shape)
    try:
        return pl.BlockSpec(shape, idx_map, pipeline_mode=pl.Buffered(1))
    except Exception:
        return pl.BlockSpec(shape, idx_map)


# ---------------------------------------------------------------------------
# Fused SingleStageModel kernel
# ---------------------------------------------------------------------------

def _stage_kernel(*refs, num_inputs, num_layers, num_classes, t_len,
                  want_out, want_feat, want_conf):
    """conv_1x1 -> [DilatedResidualLayer]*L -> conv_out*mask, feature*mask,
    softmax(out)*mask — all in one kernel, feature resident on-chip."""
    idx = 0
    mask_ref = refs[idx]; idx += 1
    x_refs = refs[idx: idx + num_inputs]; idx += num_inputs
    in_w_refs = refs[idx: idx + num_inputs]; idx += num_inputs
    in_b_ref = refs[idx]; idx += 1
    layer_refs = []
    for _ in range(num_layers):
        layer_refs.append(refs[idx: idx + 4]); idx += 4   # wd(packed), bd, w1, b1
    out_w_ref = refs[idx]; idx += 1
    out_b_ref = refs[idx]; idx += 1
    out_refs = list(refs[idx:])
    out_ref = out_refs.pop(0) if want_out else None
    feat_ref = out_refs.pop(0) if want_feat else None
    conf_ref = out_refs.pop(0) if want_conf else None

    Cpad = in_b_ref.shape[-1]
    Kpad = out_b_ref.shape[-1]

    mask = mask_ref[0]                                   # (T, 1) f32, {0,1}
    # Hoisted lane-broadcasts (JAX does not CSE broadcast_in_dim inside loops).
    mask_c = jnp.broadcast_to(mask, (t_len, Cpad))
    mask_k = mask_c if Kpad == Cpad else jnp.broadcast_to(mask, (t_len, Kpad))

    # Input 1x1 conv over the (implicitly channel-concatenated) split inputs.
    # bf16 MXU operands, f32 accumulation.
    f = jnp.dot(x_refs[0][0].astype(jnp.bfloat16), in_w_refs[0][...],
                preferred_element_type=jnp.float32)
    for k in range(1, num_inputs):
        f = f + jnp.dot(x_refs[k][0].astype(jnp.bfloat16), in_w_refs[k][...],
                        preferred_element_type=jnp.float32)
    f = f + in_b_ref[...]                                # (T, Cpad) f32

    row = lax.broadcasted_iota(jnp.int32, (t_len, Cpad), 0)   # time index

    for i in range(num_layers):
        wd_ref, bd_ref, w1_ref, b1_ref = layer_refs[i]
        d = 2 ** i
        # Kernel-3 dilated conv: one packed matmul (fills the wide MXU), then
        # roll the tap results in time (XLU slot) and zero the wrapped rows.
        y3 = jnp.dot(f.astype(jnp.bfloat16), wd_ref[...],
                     preferred_element_type=jnp.float32)        # (T, 3*Cpad)
        h = y3[:, Cpad:2 * Cpad] + bd_ref[...]                  # mid tap
        h = h + jnp.where(row >= d,
                          pltpu.roll(y3[:, 0:Cpad], shift=d, axis=0), 0.0)
        h = h + jnp.where(row < t_len - d,
                          pltpu.roll(y3[:, 2 * Cpad:3 * Cpad],
                                     shift=t_len - d, axis=0), 0.0)
        h = jnp.maximum(h, 0.0)                                  # ReLU
        y = jnp.dot(h.astype(jnp.bfloat16), w1_ref[...],
                    preferred_element_type=jnp.float32) + b1_ref[...]
        # nn.Dropout() is identity at inference (use_bn=False branch).
        f = (f + y) * mask_c

    if want_feat:
        feat_ref[0] = f.astype(feat_ref.dtype)           # f is already mask-gated

    if want_out or want_conf:
        logits = (jnp.dot(f.astype(jnp.bfloat16), out_w_ref[...],
                          preferred_element_type=jnp.float32)
                  + out_b_ref[...]) * mask_k              # (T, Kpad)
        if want_out:
            out_ref[0] = logits.astype(out_ref.dtype)
        if want_conf:
            # Softmax over the real classes only (padded lanes excluded).
            col = lax.broadcasted_iota(jnp.int32, (t_len, Kpad), 1)
            z = jnp.where(col < num_classes, logits, -1e30)
            e = jnp.exp(z - jnp.max(z, axis=-1, keepdims=True))
            denom = jnp.sum(e, axis=-1, keepdims=True)
            p = e * pl.reciprocal(denom, approx=True)      # EUP slot
            conf_ref[0] = (p * mask_k).astype(conf_ref.dtype)


def _estimate_vmem_bytes(T, inputs, params, Cpad, Kpad,
                         want_out, want_feat, want_conf):
    by = 2 * T * 4                                         # mask, double-buffered
    for x_in in inputs:
        by += 2 * T * x_in.shape[-1] * x_in.dtype.itemsize
    wbytes = (params['in_b'].nbytes + params['out_w'].nbytes
              + params['out_b'].nbytes)
    for w in params['in_w']:
        wbytes += w.nbytes
    for lp in params['layers']:
        wbytes += (lp['wd'].nbytes + lp['bd'].nbytes
                   + lp['w1'].nbytes + lp['b1'].nbytes)
    by += 2 * wbytes                                       # <=2 buffers, conservative
    if want_out:
        by += 2 * T * Kpad * 4
    if want_feat:
        by += 2 * T * Cpad * 2
    if want_conf:
        by += 2 * T * Kpad * 2
    by += 10 * T * Cpad * 4                                # in-kernel f32 temporaries
    return by


def fused_stage(inputs, mask, params, *, num_layers, num_classes,
                want_out=True, want_feat=True, want_conf=True):
    """One SingleStageModel forward as a single fused Pallas kernel.

    inputs: list of (B, T, Cin_k_pad) arrays whose channel concatenation is the
    stage input (features come already masked).  Returns (out*mask [f32],
    feature*mask [bf16], softmax(out)*mask [bf16]); absent outputs are None.
    """
    B, T, _ = inputs[0].shape
    assert T % 8 == 0, "T must be a multiple of 8 (sublane tiling)"
    assert 2 ** (num_layers - 1) < T, "max dilation must be smaller than T"
    num_inputs = len(inputs)
    Cpad = params['in_b'].shape[-1]
    Kpad = params['out_b'].shape[-1]
    for x_in, w in zip(inputs, params['in_w']):
        assert x_in.shape[-1] == w.shape[0]

    args = [mask]
    in_specs = [pl.BlockSpec((1, T, 1), lambda i: (i, 0, 0))]
    for x_in in inputs:
        in_specs.append(pl.BlockSpec((1, T, x_in.shape[-1]), lambda i: (i, 0, 0)))
        args.append(x_in)
    for w in params['in_w']:
        in_specs.append(_const_weight_spec(w.shape)); args.append(w)
    in_specs.append(_const_weight_spec(params['in_b'].shape))
    args.append(params['in_b'])
    for lp in params['layers']:
        for name in ('wd', 'bd', 'w1', 'b1'):
            in_specs.append(_const_weight_spec(lp[name].shape))
            args.append(lp[name])
    in_specs.append(_const_weight_spec(params['out_w'].shape))
    args.append(params['out_w'])
    in_specs.append(_const_weight_spec(params['out_b'].shape))
    args.append(params['out_b'])

    out_shape, out_specs = [], []
    if want_out:     # logits * mask (f32, read once at the end)
        out_shape.append(jax.ShapeDtypeStruct((B, T, Kpad), jnp.float32))
        out_specs.append(pl.BlockSpec((1, T, Kpad), lambda i: (i, 0, 0)))
    if want_feat:    # feature * mask (bf16, re-read by later stages)
        out_shape.append(jax.ShapeDtypeStruct((B, T, Cpad), jnp.bfloat16))
        out_specs.append(pl.BlockSpec((1, T, Cpad), lambda i: (i, 0, 0)))
    if want_conf:    # softmax(out) * mask (bf16)
        out_shape.append(jax.ShapeDtypeStruct((B, T, Kpad), jnp.bfloat16))
        out_specs.append(pl.BlockSpec((1, T, Kpad), lambda i: (i, 0, 0)))

    kernel = functools.partial(
        _stage_kernel, num_inputs=num_inputs, num_layers=num_layers,
        num_classes=num_classes, t_len=T,
        want_out=want_out, want_feat=want_feat, want_conf=want_conf)

    vmem = _estimate_vmem_bytes(T, inputs, params, Cpad, Kpad,
                                want_out, want_feat, want_conf)
    vmem = min(max(vmem, 32 << 20), 64 << 20)

    # TODO(synk): for very long sequences on v7x (64 MiB VMEM), add a second
    # grid axis over T-chunks with a 2*(2**num_layers - 1) frame halo.
    results = pl.pallas_call(
        kernel,
        out_shape=tuple(out_shape),
        grid=(B,),
        in_specs=in_specs,
        out_specs=tuple(out_specs),
        compiler_params=pltpu.CompilerParams(
            dimension_semantics=("parallel",),
            vmem_limit_bytes=vmem),
    )(*args)

    if not isinstance(results, (list, tuple)):
        results = [results]
    results = list(results)
    out = results.pop(0) if want_out else None
    feat = results.pop(0) if want_feat else None
    conf = results.pop(0) if want_conf else None
    return out, feat, conf


# ---------------------------------------------------------------------------
# CascadeModel composition (plain JAX glue around the fused stage kernels)
# ---------------------------------------------------------------------------

def cascade_forward(x, mask, params, *, num_stages, num_layers, num_classes,
                    soft_threshold=0.8):
    """CascadeModel.forward (inference: gt_target=None, use_lbp=False)."""
    B, T, _ = x.shape
    mask1 = mask                               # == mask[:, 0:1, :] in torch layout
    f32 = jnp.float32

    adjusted_weight = [mask1 for _ in range(num_stages)]

    out1, feat1, conf1 = fused_stage([x], mask1, params['stage1'],
                                     num_layers=num_layers,
                                     num_classes=num_classes)
    outputs = [out1]
    features = [feat1]
    confidence = [conf1.astype(f32)]

    def _adjust(conf_f32):
        max_conf = jnp.max(conf_f32, axis=-1, keepdims=True)
        decrease = (max_conf > soft_threshold).astype(f32)
        increase = mask1 - decrease
        return jnp.exp(-max_conf) * decrease + jnp.exp(max_conf) * increase

    if num_stages > 1:
        adjusted_weight[1] = _adjust(confidence[0])

    for s_idx in range(num_stages - 1):
        curr_stage = s_idx + 1
        is_last = curr_stage == num_stages - 1
        # Inter-stage concat is handled inside the fused kernel via split input
        # refs + split input-conv weights (no HBM materialisation of the concat).
        stage_inputs = list(features) + [x]
        curr_out, curr_feat, curr_conf = fused_stage(
            stage_inputs, mask1, params['stages'][s_idx],
            num_layers=num_layers, num_classes=num_classes,
            want_feat=not is_last)        # last stage's feature is never consumed
        outputs.append(curr_out)
        if curr_feat is not None:
            features.append(curr_feat)
        confidence.append(curr_conf.astype(f32))
        if is_last:
            break
        adjusted_weight[curr_stage + 1] = _adjust(confidence[curr_stage])

    output_weight = jnp.stack(adjusted_weight, axis=0)      # (num_stages, B, T, 1)
    denom = jnp.sum(output_weight, axis=0)
    # Guard fully-masked time steps (denominator 0 would give NaN in the
    # original too, but they are zeroed by the final *mask anyway); identical
    # results wherever mask == 1.
    aw = output_weight / jnp.where(denom > 0, denom, 1.0)

    # Reuse the already-computed confidences (softmax*mask) — identical to
    # softmax*aw*mask because the mask is {0,1} and aw is mask-gated.
    confF = confidence[0] * aw[0]
    for i in range(1, num_stages):
        confF = confF + confidence[i] * aw[i]
    confidenceF = confF * mask1

    # TODO(synk): fullBGM and LocalBarrierPooling are not defined in the
    # reference source; barrier / LBP path is skipped (use_lbp=False) and
    # BGM_output is a zeros placeholder.
    BGM_output = jnp.zeros((B, T, 1), x.dtype)

    _, _, confL = fused_stage([confidenceF], mask1, params['stageF'],
                              num_layers=num_layers, num_classes=num_classes,
                              want_out=False, want_feat=False)
    confidence_last = jnp.clip(confL.astype(f32), 1e-4, 1.0 - 1e-4) * mask1

    out_stack = jnp.stack(outputs + [confidence_last], axis=0)
    # Slice padded class lanes back to the real num_classes.
    return out_stack[..., :num_classes], BGM_output, output_weight


# ---------------------------------------------------------------------------
# Deterministic parameter initialization (padded to 128-lane channel layout)
# ---------------------------------------------------------------------------

def _normal(key, shape, scale=0.1):
    return scale * jax.random.normal(key, shape, dtype=jnp.float32)


def _pad_to(a, shape):
    return jnp.pad(a, [(0, s - d) for d, s in zip(a.shape, shape)])


def init_stage_params(key, num_layers, num_f_maps, in_dims, num_classes):
    """in_dims: list of real input-channel counts (concat split order).
    Matmul weights are stored bf16 (MXU operand dtype); biases stay f32."""
    Cpad = _round_up(num_f_maps)
    Kpad = _round_up(num_classes)
    bf16 = jnp.bfloat16
    n_in = len(in_dims)
    keys = jax.random.split(key, n_in + 3 + 4 * num_layers)
    ki = 0
    in_w = []
    for dlen in in_dims:
        w = _normal(keys[ki], (dlen, num_f_maps)); ki += 1
        in_w.append(_pad_to(w, (_round_up(dlen), Cpad)).astype(bf16))
    in_b = _pad_to(_normal(keys[ki], (1, num_f_maps)), (1, Cpad)); ki += 1
    layers = []
    for _ in range(num_layers):
        taps = _pad_to(_normal(keys[ki], (3, num_f_maps, num_f_maps)),
                       (3, Cpad, Cpad)); ki += 1
        # Pack the 3 dilation taps side-by-side: one (Cpad, 3*Cpad) RHS so a
        # single matmul per layer fills the 256-wide MXU on v6e/v7x.
        wd = jnp.concatenate([taps[0], taps[1], taps[2]], axis=1).astype(bf16)
        bd = _pad_to(_normal(keys[ki], (1, num_f_maps)), (1, Cpad)); ki += 1
        w1 = _pad_to(_normal(keys[ki], (num_f_maps, num_f_maps)),
                     (Cpad, Cpad)).astype(bf16); ki += 1
        b1 = _pad_to(_normal(keys[ki], (1, num_f_maps)), (1, Cpad)); ki += 1
        layers.append({'wd': wd, 'bd': bd, 'w1': w1, 'b1': b1})
    out_w = _pad_to(_normal(keys[ki], (num_f_maps, num_classes)),
                    (Cpad, Kpad)).astype(bf16); ki += 1
    out_b = _pad_to(_normal(keys[ki], (1, num_classes)), (1, Kpad)); ki += 1
    return {'in_w': in_w, 'in_b': in_b, 'layers': layers,
            'out_w': out_w, 'out_b': out_b}


def init_cascade_params(key, num_stages, num_layers, num_f_maps, dim,
                        num_classes):
    keys = jax.random.split(key, num_stages + 1)
    params = {
        'stage1': init_stage_params(keys[0], num_layers, num_f_maps,
                                    [dim], num_classes),
        'stages': [],
    }
    for s in range(num_stages - 1):
        in_dims = [num_f_maps] * (s + 1) + [dim]
        params['stages'].append(
            init_stage_params(keys[1 + s], num_layers, num_f_maps,
                              in_dims, num_classes))
    params['stageF'] = init_stage_params(keys[num_stages], num_layers, 64,
                                         [num_classes], num_classes)
    return params


# ---------------------------------------------------------------------------

if __name__ == "__main__":
    num_stages, num_layers, num_f_maps, dim, num_classes = 3, 2, 8, 16, 8
    B, T = 2, 16

    key = jax.random.PRNGKey(0)
    kx, kp = jax.random.split(key)
    # x is (B, T, dim) here (channels-last); the PyTorch module takes (B, dim, T).
    x_real = jax.random.normal(kx, (B, T, dim), jnp.float32)
    x = jnp.pad(x_real, ((0, 0), (0, 0), (0, _round_up(dim) - dim)))
    mask = jnp.ones((B, T, 1), jnp.float32)    # mask[:, 0:1, :] equivalent

    params = init_cascade_params(kp, num_stages, num_layers, num_f_maps, dim,
                                 num_classes)

    outputs, bgm_out, out_weight = cascade_forward(
        x, mask, params, num_stages=num_stages, num_layers=num_layers,
        num_classes=num_classes)
    jax.block_until_ready((outputs, bgm_out, out_weight))

    assert outputs.shape == (num_stages + 1, B, T, num_classes)
    assert out_weight.shape == (num_stages, B, T, 1)
    assert bool(jnp.all(jnp.isfinite(outputs)))
    assert bool(jnp.all(jnp.isfinite(out_weight)))
    print("KERNEL_OK")
</pallas_src>

<mosaic_0001>
module attributes {stable_mosaic.version = 11 : i64} {
  func.func @_stage_kernel(%arg0: i32, %arg1: memref<1x16x1xf32, #tpu.memory_space<vmem>>, %arg2: memref<1x16x128xf32, #tpu.memory_space<vmem>>, %arg3: memref<128x128xbf16, #tpu.memory_space<vmem>>, %arg4: memref<1x128xf32, #tpu.memory_space<vmem>>, %arg5: memref<128x384xbf16, #tpu.memory_space<vmem>>, %arg6: memref<1x128xf32, #tpu.memory_space<vmem>>, %arg7: memref<128x128xbf16, #tpu.memory_space<vmem>>, %arg8: memref<1x128xf32, #tpu.memory_space<vmem>>, %arg9: memref<128x384xbf16, #tpu.memory_space<vmem>>, %arg10: memref<1x128xf32, #tpu.memory_space<vmem>>, %arg11: memref<128x128xbf16, #tpu.memory_space<vmem>>, %arg12: memref<1x128xf32, #tpu.memory_space<vmem>>, %arg13: memref<128x128xbf16, #tpu.memory_space<vmem>>, %arg14: memref<1x128xf32, #tpu.memory_space<vmem>>, %arg15: memref<1x16x128xf32, #tpu.memory_space<vmem>>, %arg16: memref<1x16x128xbf16, #tpu.memory_space<vmem>>, %arg17: memref<1x16x128xbf16, #tpu.memory_space<vmem>>) attributes {dimension_semantics = [#tpu.dimension_semantics<parallel>], iteration_bounds = array<i64: 2>, scalar_prefetch = 0 : i64, scratch_operands = 0 : i64, tpu.core_type = #tpu.core_type<tc>, window_params = [{transform_indices = @transform_0, window_bounds = array<i64: 1, 16, 1>}, {transform_indices = @transform_1, window_bounds = array<i64: 1, 16, 128>}, {pipeline_mode = #tpu.pipeline_mode<synchronous>, transform_indices = @transform_2, window_bounds = array<i64: 128, 128>}, {pipeline_mode = #tpu.pipeline_mode<synchronous>, transform_indices = @transform_3, window_bounds = array<i64: 1, 128>}, {pipeline_mode = #tpu.pipeline_mode<synchronous>, transform_indices = @transform_4, window_bounds = array<i64: 128, 384>}, {pipeline_mode = #tpu.pipeline_mode<synchronous>, transform_indices = @transform_5, window_bounds = array<i64: 1, 128>}, {pipeline_mode = #tpu.pipeline_mode<synchronous>, transform_indices = @transform_6, window_bounds = array<i64: 128, 128>}, {pipeline_mode = #tpu.pipeline_mode<synchronous>, transform_indices = @transform_7, window_bounds = array<i64: 1, 128>}, {pipeline_mode = #tpu.pipeline_mode<synchronous>, transform_indices = @transform_8, window_bounds = array<i64: 128, 384>}, {pipeline_mode = #tpu.pipeline_mode<synchronous>, transform_indices = @transform_9, window_bounds = array<i64: 1, 128>}, {pipeline_mode = #tpu.pipeline_mode<synchronous>, transform_indices = @transform_10, window_bounds = array<i64: 128, 128>}, {pipeline_mode = #tpu.pipeline_mode<synchronous>, transform_indices = @transform_11, window_bounds = array<i64: 1, 128>}, {pipeline_mode = #tpu.pipeline_mode<synchronous>, transform_indices = @transform_12, window_bounds = array<i64: 128, 128>}, {pipeline_mode = #tpu.pipeline_mode<synchronous>, transform_indices = @transform_13, window_bounds = array<i64: 1, 128>}, {transform_indices = @transform_14, window_bounds = array<i64: 1, 16, 128>}, {transform_indices = @transform_15, window_bounds = array<i64: 1, 16, 128>}, {transform_indices = @transform_16, window_bounds = array<i64: 1, 16, 128>}]} {
    %c0 = arith.constant 0 : index
    %c0_0 = arith.constant 0 : index
    %c0_1 = arith.constant 0 : index
    %0 = vector.load %arg1[%c0, %c0_0, %c0_1] : memref<1x16x1xf32, #tpu.memory_space<vmem>>, vector<1x16x1xf32>
    %1 = vector.shape_cast %0 : vector<1x16x1xf32> to vector<16x1xf32>
    %2 = vector.shape_cast %1 : vector<16x1xf32> to vector<16x1xf32>
    %3 = vector.broadcast %2 : vector<16x1xf32> to vector<16x128xf32>
    %c0_2 = arith.constant 0 : index
    %c0_3 = arith.constant 0 : index
    %c0_4 = arith.constant 0 : index
    %4 = vector.load %arg2[%c0_2, %c0_3, %c0_4] : memref<1x16x128xf32, #tpu.memory_space<vmem>>, vector<1x16x128xf32>
    %5 = vector.shape_cast %4 : vector<1x16x128xf32> to vector<16x128xf32>
    %6 = arith.truncf %5 : vector<16x128xf32> to vector<16x128xbf16>
    %c0_5 = arith.constant 0 : index
    %c0_6 = arith.constant 0 : index
    %7 = vector.load %arg3[%c0_5, %c0_6] : memref<128x128xbf16, #tpu.memory_space<vmem>>, vector<128x128xbf16>
    %cst = arith.constant dense<0.000000e+00> : vector<16x128xf32>
    %8 = tpu.matmul %6, %7, %cst {dimension_numbers = #tpu.dot_dimension_numbers<[1], [0], [0], [1], [0, 0, 1, 1], [], []>} : vector<16x128xbf16>, vector<128x128xbf16>, vector<16x128xf32> -> vector<16x128xf32>
    %c0_7 = arith.constant 0 : index
    %c0_8 = arith.constant 0 : index
    %9 = vector.load %arg4[%c0_7, %c0_8] : memref<1x128xf32, #tpu.memory_space<vmem>>, vector<1x128xf32>
    %10 = vector.broadcast %9 : vector<1x128xf32> to vector<16x128xf32>
    %11 = arith.addf %8, %10 : vector<16x128xf32>
    %12 = tpu.iota {dimensions = array<i32: 0>} : vector<16x128xi32>
    %13 = arith.truncf %11 : vector<16x128xf32> to vector<16x128xbf16>
    %c0_9 = arith.constant 0 : index
    %c0_10 = arith.constant 0 : index
    %14 = vector.load %arg5[%c0_9, %c0_10] : memref<128x384xbf16, #tpu.memory_space<vmem>>, vector<128x384xbf16>
    %cst_11 = arith.constant dense<0.000000e+00> : vector<16x384xf32>
    %15 = tpu.matmul %13, %14, %cst_11 {dimension_numbers = #tpu.dot_dimension_numbers<[1], [0], [0], [1], [0, 0, 1, 1], [], []>} : vector<16x128xbf16>, vector<128x384xbf16>, vector<16x384xf32> -> vector<16x384xf32>
    %16 = vector.extract_strided_slice %15 {offsets = [0, 128], sizes = [16, 128], strides = [1, 1]} : vector<16x384xf32> to vector<16x128xf32>
    %c0_12 = arith.constant 0 : index
    %c0_13 = arith.constant 0 : index
    %17 = vector.load %arg6[%c0_12, %c0_13] : memref<1x128xf32, #tpu.memory_space<vmem>>, vector<1x128xf32>
    %18 = vector.broadcast %17 : vector<1x128xf32> to vector<16x128xf32>
    %19 = arith.addf %16, %18 : vector<16x128xf32>
    %c1_i32 = arith.constant 1 : i32
    %20 = vector.broadcast %c1_i32 : i32 to vector<16x128xi32>
    %21 = arith.cmpi sge, %12, %20 : vector<16x128xi32>
    %22 = vector.extract_strided_slice %15 {offsets = [0, 0], sizes = [16, 128], strides = [1, 1]} : vector<16x384xf32> to vector<16x128xf32>
    %c1_i32_14 = arith.constant 1 : i32
    %23 = tpu.dynamic_rotate %22 by %c1_i32_14 dim 0 : vector<16x128xf32>, i32 -> vector<16x128xf32>
    %cst_15 = arith.constant 0.000000e+00 : f32
    %24 = vector.broadcast %cst_15 : f32 to vector<16x128xf32>
    %25 = arith.select %21, %23, %24 : vector<16x128xi1>, vector<16x128xf32>
    %26 = arith.addf %19, %25 : vector<16x128xf32>
    %c15_i32 = arith.constant 15 : i32
    %27 = vector.broadcast %c15_i32 : i32 to vector<16x128xi32>
    %28 = arith.cmpi slt, %12, %27 : vector<16x128xi32>
    %29 = vector.extract_strided_slice %15 {offsets = [0, 256], sizes = [16, 128], strides = [1, 1]} : vector<16x384xf32> to vector<16x128xf32>
    %c15_i32_16 = arith.constant 15 : i32
    %30 = tpu.dynamic_rotate %29 by %c15_i32_16 dim 0 : vector<16x128xf32>, i32 -> vector<16x128xf32>
    %cst_17 = arith.constant 0.000000e+00 : f32
    %31 = vector.broadcast %cst_17 : f32 to vector<16x128xf32>
    %32 = arith.select %28, %30, %31 : vector<16x128xi1>, vector<16x128xf32>
    %33 = arith.addf %26, %32 : vector<16x128xf32>
    %cst_18 = arith.constant 0.000000e+00 : f32
    %34 = vector.broadcast %cst_18 : f32 to vector<16x128xf32>
    %35 = arith.maximumf %33, %34 : vector<16x128xf32>
    %36 = arith.truncf %35 : vector<16x128xf32> to vector<16x128xbf16>
    %c0_19 = arith.constant 0 : index
    %c0_20 = arith.constant 0 : index
    %37 = vector.load %arg7[%c0_19, %c0_20] : memref<128x128xbf16, #tpu.memory_space<vmem>>, vector<128x128xbf16>
    %cst_21 = arith.constant dense<0.000000e+00> : vector<16x128xf32>
    %38 = tpu.matmul %36, %37, %cst_21 {dimension_numbers = #tpu.dot_dimension_numbers<[1], [0], [0], [1], [0, 0, 1, 1], [], []>} : vector<16x128xbf16>, vector<128x128xbf16>, vector<16x128xf32> -> vector<16x128xf32>
    %c0_22 = arith.constant 0 : index
    %c0_23 = arith.constant 0 : index
    %39 = vector.load %arg8[%c0_22, %c0_23] : memref<1x128xf32, #tpu.memory_space<vmem>>, vector<1x128xf32>
    %40 = vector.broadcast %39 : vector<1x128xf32> to vector<16x128xf32>
    %41 = arith.addf %38, %40 : vector<16x128xf32>
    %42 = arith.addf %11, %41 : vector<16x128xf32>
    %43 = arith.mulf %42, %3 : vector<16x128xf32>
    %44 = arith.truncf %43 : vector<16x128xf32> to vector<16x128xbf16>
    %c0_24 = arith.constant 0 : index
    %c0_25 = arith.constant 0 : index
    %45 = vector.load %arg9[%c0_24, %c0_25] : memref<128x384xbf16, #tpu.memory_space<vmem>>, vector<128x384xbf16>
    %cst_26 = arith.constant dense<0.000000e+00> : vector<16x384xf32>
    %46 = tpu.matmul %44, %45, %cst_26 {dimension_numbers = #tpu.dot_dimension_numbers<[1], [0], [0], [1], [0, 0, 1, 1], [], []>} : vector<16x128xbf16>, vector<128x384xbf16>, vector<16x384xf32> -> vector<16x384xf32>
    %47 = vector.extract_strided_slice %46 {offsets = [0, 128], sizes = [16, 128], strides = [1, 1]} : vector<16x384xf32> to vector<16x128xf32>
    %c0_27 = arith.constant 0 : index
    %c0_28 = arith.constant 0 : index
    %48 = vector.load %arg10[%c0_27, %c0_28] : memref<1x128xf32, #tpu.memory_space<vmem>>, vector<1x128xf32>
    %49 = vector.broadcast %48 : vector<1x128xf32> to vector<16x128xf32>
    %50 = arith.addf %47, %49 : vector<16x128xf32>
    %c2_i32 = arith.constant 2 : i32
    %51 = vector.broadcast %c2_i32 : i32 to vector<16x128xi32>
    %52 = arith.cmpi sge, %12, %51 : vector<16x128xi32>
    %53 = vector.extract_strided_slice %46 {offsets = [0, 0], sizes = [16, 128], strides = [1, 1]} : vector<16x384xf32> to vector<16x128xf32>
    %c2_i32_29 = arith.constant 2 : i32
    %54 = tpu.dynamic_rotate %53 by %c2_i32_29 dim 0 : vector<16x128xf32>, i32 -> vector<16x128xf32>
    %cst_30 = arith.constant 0.000000e+00 : f32
    %55 = vector.broadcast %cst_30 : f32 to vector<16x128xf32>
    %56 = arith.select %52, %54, %55 : vector<16x128xi1>, vector<16x128xf32>
    %57 = arith.addf %50, %56 : vector<16x128xf32>
    %c14_i32 = arith.constant 14 : i32
    %58 = vector.broadcast %c14_i32 : i32 to vector<16x128xi32>
    %59 = arith.cmpi slt, %12, %58 : vector<16x128xi32>
    %60 = vector.extract_strided_slice %46 {offsets = [0, 256], sizes = [16, 128], strides = [1, 1]} : vector<16x384xf32> to vector<16x128xf32>
    %c14_i32_31 = arith.constant 14 : i32
    %61 = tpu.dynamic_rotate %60 by %c14_i32_31 dim 0 : vector<16x128xf32>, i32 -> vector<16x128xf32>
    %cst_32 = arith.constant 0.000000e+00 : f32
    %62 = vector.broadcast %cst_32 : f32 to vector<16x128xf32>
    %63 = arith.select %59, %61, %62 : vector<16x128xi1>, vector<16x128xf32>
    %64 = arith.addf %57, %63 : vector<16x128xf32>
    %cst_33 = arith.constant 0.000000e+00 : f32
    %65 = vector.broadcast %cst_33 : f32 to vector<16x128xf32>
    %66 = arith.maximumf %64, %65 : vector<16x128xf32>
    %67 = arith.truncf %66 : vector<16x128xf32> to vector<16x128xbf16>
    %c0_34 = arith.constant 0 : index
    %c0_35 = arith.constant 0 : index
    %68 = vector.load %arg11[%c0_34, %c0_35] : memref<128x128xbf16, #tpu.memory_space<vmem>>, vector<128x128xbf16>
    %cst_36 = arith.constant dense<0.000000e+00> : vector<16x128xf32>
    %69 = tpu.matmul %67, %68, %cst_36 {dimension_numbers = #tpu.dot_dimension_numbers<[1], [0], [0], [1], [0, 0, 1, 1], [], []>} : vector<16x128xbf16>, vector<128x128xbf16>, vector<16x128xf32> -> vector<16x128xf32>
    %c0_37 = arith.constant 0 : index
    %c0_38 = arith.constant 0 : index
    %70 = vector.load %arg12[%c0_37, %c0_38] : memref<1x128xf32, #tpu.memory_space<vmem>>, vector<1x128xf32>
    %71 = vector.broadcast %70 : vector<1x128xf32> to vector<16x128xf32>
    %72 = arith.addf %69, %71 : vector<16x128xf32>
    %73 = arith.addf %43, %72 : vector<16x128xf32>
    %74 = arith.mulf %73, %3 : vector<16x128xf32>
    %75 = arith.truncf %74 : vector<16x128xf32> to vector<16x128xbf16>
    %c0_39 = arith.constant 0 : index
    %c0_40 = arith.constant 0 : index
    %c0_41 = arith.constant 0 : index
    %76 = vector.load %arg16[%c0_39, %c0_40, %c0_41] : memref<1x16x128xbf16, #tpu.memory_space<vmem>>, vector<1x16x128xbf16>
    %77 = vector.shape_cast %76 : vector<1x16x128xbf16> to vector<16x128xbf16>
    %78 = vector.shape_cast %75 : vector<16x128xbf16> to vector<1x16x128xbf16>
    tpu.vector_store %arg16[%c0_39, %c0_40, %c0_41], %78 {strides = array<i32>} : memref<1x16x128xbf16, #tpu.memory_space<vmem>>, vector<1x16x128xbf16>,
    %79 = arith.truncf %74 : vector<16x128xf32> to vector<16x128xbf16>
    %c0_42 = arith.constant 0 : index
    %c0_43 = arith.constant 0 : index
    %80 = vector.load %arg13[%c0_42, %c0_43] : memref<128x128xbf16, #tpu.memory_space<vmem>>, vector<128x128xbf16>
    %cst_44 = arith.constant dense<0.000000e+00> : vector<16x128xf32>
    %81 = tpu.matmul %79, %80, %cst_44 {dimension_numbers = #tpu.dot_dimension_numbers<[1], [0], [0], [1], [0, 0, 1, 1], [], []>} : vector<16x128xbf16>, vector<128x128xbf16>, vector<16x128xf32> -> vector<16x128xf32>
    %c0_45 = arith.constant 0 : index
    %c0_46 = arith.constant 0 : index
    %82 = vector.load %arg14[%c0_45, %c0_46] : memref<1x128xf32, #tpu.memory_space<vmem>>, vector<1x128xf32>
    %83 = vector.broadcast %82 : vector<1x128xf32> to vector<16x128xf32>
    %84 = arith.addf %81, %83 : vector<16x128xf32>
    %85 = arith.mulf %84, %3 : vector<16x128xf32>
    %c0_47 = arith.constant 0 : index
    %c0_48 = arith.constant 0 : index
    %c0_49 = arith.constant 0 : index
    %86 = vector.load %arg15[%c0_47, %c0_48, %c0_49] : memref<1x16x128xf32, #tpu.memory_space<vmem>>, vector<1x16x128xf32>
    %87 = vector.shape_cast %86 : vector<1x16x128xf32> to vector<16x128xf32>
    %88 = vector.shape_cast %85 : vector<16x128xf32> to vector<1x16x128xf32>
    tpu.vector_store %arg15[%c0_47, %c0_48, %c0_49], %88 {strides = array<i32>} : memref<1x16x128xf32, #tpu.memory_space<vmem>>, vector<1x16x128xf32>,
    %89 = tpu.iota {dimensions = array<i32: 1>} : vector<16x128xi32>
    %c8_i32 = arith.constant 8 : i32
    %90 = vector.broadcast %c8_i32 : i32 to vector<16x128xi32>
    %91 = arith.cmpi slt, %89, %90 : vector<16x128xi32>
    %cst_50 = arith.constant -1.000000e+30 : f32
    %92 = vector.broadcast %cst_50 : f32 to vector<16x128xf32>
    %93 = arith.select %91, %85, %92 : vector<16x128xi1>, vector<16x128xf32>
    %cst_51 = arith.constant dense<0xFF800000> : vector<16xf32>
    %94 = vector.multi_reduction <maximumf>, %93, %cst_51 [1] : vector<16x128xf32> to vector<16xf32>
    %95 = vector.shape_cast %94 : vector<16xf32> to vector<16x1xf32>
    %96 = vector.broadcast %95 : vector<16x1xf32> to vector<16x128xf32>
    %97 = arith.subf %93, %96 : vector<16x128xf32>
    %98 = math.exp %97 : vector<16x128xf32>
    %cst_52 = arith.constant dense<0.000000e+00> : vector<16xf32>
    %99 = vector.multi_reduction <add>, %98, %cst_52 [1] : vector<16x128xf32> to vector<16xf32>
    %100 = vector.shape_cast %99 : vector<16xf32> to vector<16x1xf32>
    %101 = tpu.reciprocal %100 {approx = true} : vector<16x1xf32> -> vector<16x1xf32>
    %102 = vector.broadcast %101 : vector<16x1xf32> to vector<16x128xf32>
    %103 = arith.mulf %98, %102 : vector<16x128xf32>
    %104 = arith.mulf %103, %3 : vector<16x128xf32>
    %105 = arith.truncf %104 : vector<16x128xf32> to vector<16x128xbf16>
    %c0_53 = arith.constant 0 : index
    %c0_54 = arith.constant 0 : index
    %c0_55 = arith.constant 0 : index
    %106 = vector.load %arg17[%c0_53, %c0_54, %c0_55] : memref<1x16x128xbf16, #tpu.memory_space<vmem>>, vector<1x16x128xbf16>
    %107 = vector.shape_cast %106 : vector<1x16x128xbf16> to vector<16x128xbf16>
    %108 = vector.shape_cast %105 : vector<16x128xbf16> to vector<1x16x128xbf16>
    tpu.vector_store %arg17[%c0_53, %c0_54, %c0_55], %108 {strides = array<i32>} : memref<1x16x128xbf16, #tpu.memory_space<vmem>>, vector<1x16x128xbf16>,
    return
  }
  func.func @transform_0(%arg0: i32) -> (i32, i32, i32) {
    %c0_i32 = arith.constant 0 : i32
    %c0_i32_0 = arith.constant 0 : i32
    %c0_i32_1 = arith.constant 0 : i32
    return %arg0, %c0_i32, %c0_i32_0 : i32, i32, i32
  }
  func.func @transform_1(%arg0: i32) -> (i32, i32, i32) {
    %c0_i32 = arith.constant 0 : i32
    %c0_i32_0 = arith.constant 0 : i32
    %c0_i32_1 = arith.constant 0 : i32
    return %arg0, %c0_i32, %c0_i32_0 : i32, i32, i32
  }
  func.func @transform_2(%arg0: i32) -> (i32, i32) {
    %c0_i32 = arith.constant 0 : i32
    %c0_i32_0 = arith.constant 0 : i32
    %c0_i32_1 = arith.constant 0 : i32
    return %c0_i32, %c0_i32_0 : i32, i32
  }
  func.func @transform_3(%arg0: i32) -> (i32, i32) {
    %c0_i32 = arith.constant 0 : i32
    %c0_i32_0 = arith.constant 0 : i32
    %c0_i32_1 = arith.constant 0 : i32
    return %c0_i32, %c0_i32_0 : i32, i32
  }
  func.func @transform_4(%arg0: i32) -> (i32, i32) {
    %c0_i32 = arith.constant 0 : i32
    %c0_i32_0 = arith.constant 0 : i32
    %c0_i32_1 = arith.constant 0 : i32
    return %c0_i32, %c0_i32_0 : i32, i32
  }
  func.func @transform_5(%arg0: i32) -> (i32, i32) {
    %c0_i32 = arith.constant 0 : i32
    %c0_i32_0 = arith.constant 0 : i32
    %c0_i32_1 = arith.constant 0 : i32
    return %c0_i32, %c0_i32_0 : i32, i32
  }
  func.func @transform_6(%arg0: i32) -> (i32, i32) {
    %c0_i32 = arith.constant 0 : i32
    %c0_i32_0 = arith.constant 0 : i32
    %c0_i32_1 = arith.constant 0 : i32
    return %c0_i32, %c0_i32_0 : i32, i32
  }
  func.func @transform_7(%arg0: i32) -> (i32, i32) {
    %c0_i32 = arith.constant 0 : i32
    %c0_i32_0 = arith.constant 0 : i32
    %c0_i32_1 = arith.constant 0 : i32
    return %c0_i32, %c0_i32_0 : i32, i32
  }
  func.func @transform_8(%arg0: i32) -> (i32, i32) {
    %c0_i32 = arith.constant 0 : i32
    %c0_i32_0 = arith.constant 0 : i32
    %c0_i32_1 = arith.constant 0 : i32
    return %c0_i32, %c0_i32_0 : i32, i32
  }
  func.func @transform_9(%arg0: i32) -> (i32, i32) {
    %c0_i32 = arith.constant 0 : i32
    %c0_i32_0 = arith.constant 0 : i32
    %c0_i32_1 = arith.constant 0 : i32
    return %c0_i32, %c0_i32_0 : i32, i32
  }
  func.func @transform_10(%arg0: i32) -> (i32, i32) {
    %c0_i32 = arith.constant 0 : i32
    %c0_i32_0 = arith.constant 0 : i32
    %c0_i32_1 = arith.constant 0 : i32
    return %c0_i32, %c0_i32_0 : i32, i32
  }
  func.func @transform_11(%arg0: i32) -> (i32, i32) {
    %c0_i32 = arith.constant 0 : i32
    %c0_i32_0 = arith.constant 0 : i32
    %c0_i32_1 = arith.constant 0 : i32
    return %c0_i32, %c0_i32_0 : i32, i32
  }
  func.func @transform_12(%arg0: i32) -> (i32, i32) {
    %c0_i32 = arith.constant 0 : i32
    %c0_i32_0 = arith.constant 0 : i32
    %c0_i32_1 = arith.constant 0 : i32
    return %c0_i32, %c0_i32_0 : i32, i32
  }
  func.func @transform_13(%arg0: i32) -> (i32, i32) {
    %c0_i32 = arith.constant 0 : i32
    %c0_i32_0 = arith.constant 0 : i32
    %c0_i32_1 = arith.constant 0 : i32
    return %c0_i32, %c0_i32_0 : i32, i32
  }
  func.func @transform_14(%arg0: i32) -> (i32, i32, i32) {
    %c0_i32 = arith.constant 0 : i32
    %c0_i32_0 = arith.constant 0 : i32
    %c0_i32_1 = arith.constant 0 : i32
    return %arg0, %c0_i32, %c0_i32_0 : i32, i32, i32
  }
  func.func @transform_15(%arg0: i32) -> (i32, i32, i32) {
    %c0_i32 = arith.constant 0 : i32
    %c0_i32_0 = arith.constant 0 : i32
    %c0_i32_1 = arith.constant 0 : i32
    return %arg0, %c0_i32, %c0_i32_0 : i32, i32, i32
  }
  func.func @transform_16(%arg0: i32) -> (i32, i32, i32) {
    %c0_i32 = arith.constant 0 : i32
    %c0_i32_0 = arith.constant 0 : i32
    %c0_i32_1 = arith.constant 0 : i32
    return %arg0, %c0_i32, %c0_i32_0 : i32, i32, i32
  }
}

</mosaic_0001>

<bundles_post_ra>
// kernel: tpu_custom_call.1
= control target key start
LH: loop header
LB: loop body
LE: loop exit
PB: predicated region body
PF: predicated region fallthrough
CT: control target
= control target key end

     0   :  { %s3072_s0 = inlined_call_operand.vmem [shape: f32[2,16,1], index: 0, kind: input, shape index: {}]   ;;  %s3073_s1 = inlined_call_operand.vmem [shape: f32[2,16,128], index: 1, kind: input, shape index: {}]   ;;  %s3074_s2 = inlined_call_operand.hbm [shape: bf16[128,128], index: 2, kind: input, shape index: {}]   ;;  %s3075_s3 = inlined_call_operand.vmem [shape: f32[1,128], index: 3, kind: input, shape index: {}]   ;;  %s3076_s4 = inlined_call_operand.hbm [shape: bf16[128,384], index: 4, kind: input, shape index: {}]   ;;  %s3077_s5 = inlined_call_operand.vmem [shape: f32[1,128], index: 5, kind: input, shape index: {}]   ;;  %s3078_s6 = inlined_call_operand.hbm [shape: bf16[128,128], index: 6, kind: input, shape index: {}]   ;;  %s3079_s7 = inlined_call_operand.vmem [shape: f32[1,128], index: 7, kind: input, shape index: {}]   ;;  %s3080_s8 = inlined_call_operand.hbm [shape: bf16[128,384], index: 8, kind: input, shape index: {}]   ;;  %s3081_s9 = inlined_call_operand.vmem [shape: f32[1,128], index: 9, kind: input, shape index: {}]   ;;  %s3082_s10 = inlined_call_operand.hbm [shape: bf16[128,128], index: 10, kind: input, shape index: {}]   ;;  %s3083_s11 = inlined_call_operand.vmem [shape: f32[1,128], index: 11, kind: input, shape index: {}]   ;;  %s3084_s12 = inlined_call_operand.hbm [shape: bf16[128,128], index: 12, kind: input, shape index: {}]   ;;  %s3085_s13 = inlined_call_operand.vmem [shape: f32[1,128], index: 13, kind: input, shape index: {}]   ;;  %s3086_s14 = inlined_call_operand.hbm [shape: f32[2,16,128], index: 14, kind: output, shape index: {0}]   ;;  %s3087_s15 = inlined_call_operand.hbm [shape: bf16[2,16,128], index: 15, kind: output, shape index: {1}]   ;;  %s3088_s16 = inlined_call_operand.hbm [shape: bf16[2,16,128], index: 16, kind: output, shape index: {2}]  }
   0x1   :  { %3102 = sst [smem:[#allocation29_spill]] %s3072_s0 }
   0x2   :  { %3103 = sst [smem:[#allocation30_spill]] %s3073_s1 }
   0x3   :  { %3104 = sst [smem:[#allocation31_spill]] %s3074_s2 }
   0x4   :  { %3105 = sst [smem:[#allocation32_spill]] %s3075_s3 }
   0x5   :  { %3106 = sst [smem:[#allocation33_spill]] %s3076_s4 }
   0x6   :  { %3107 = sst [smem:[#allocation34_spill]] %s3080_s8 }
   0x7   :  { %3108 = sst [smem:[#allocation35_spill]] %s3086_s14 }
   0x8   :  { %3109 = sst [smem:[#allocation36_spill]] %s3087_s15 }
   0x9   :  { %3110 = sst [smem:[#allocation37_spill]] %s3088_s16 }
   0xa   :  { %22 = vsyncpa [#allocation3], 0 }
   0xb   :  { %23 = vsyncpa [#allocation6], 0 }
   0xc   :  { %24 = vsyncpa [#allocation9], 0 }
   0xd   :  { %25 = vsyncpa [#allocation12], 0 }
   0xe   :  { %26 = vsyncpa [#allocation4], 0 }
   0xf   :  { %28 = vsyncpa [#allocation4 + $0x1], 0 }
  0x10   :  { %29 = vsyncpa [#allocation15], 0 }
  0x11   :  { %31 = vsyncpa [#allocation15 + $0x1], 0  ;;  %s2783_s21 = smov 0   ;;  %s2785_s22 = smov 0  }
  0x12   :  { %s2787_s23 = smov 0   ;;  %s2789_s24 = smov 0  }
  0x13 LB: > { %3111 = sst [smem:[#allocation23_spill]] %s2669_s21  ;;  %s2804_s25 = sadd.s32 4294967295, %s2681_s24   ;;  %s2681_s24 = sphi %s2789_s24, %s3136_s24   ;;  %s2677_s23 = sphi %s2787_s23, %s3138_s23   ;;  %s2673_s22 = sphi %s2785_s22, %s3140_s22   ;;  %s2669_s21 = sphi %s2783_s21, %s3139_s21  }
  0x14   : > { %3112 = sst [smem:[#allocation24_spill]] %s2677_s23  ;;  %s3089_s26 = sadd.s32 4294967294, %s2681_s24  }
  0x15   : > { %3113 = sst [smem:[#allocation25_spill]] %s2681_s24  ;;  %s2808_s27 = sadd.s32 1, %s2681_s24  }
  0x16   : > { %3114 = sst [smem:[#allocation26_spill]] %s2808_s27  ;;  %s348_s28 = sadd.s32 1, %s2677_s23 }
  0x17   : > { %s345_s29 = ssub.s32 %s2681_s24, %s2808_s27  ;;  %p358_p0 = scmp.ne.s32.totalorder %s2677_s23, %s2673_s22 }
  0x18   : > { %p346_p1 = scmp.eq.s32.totalorder %s345_s29, 0  ;;  %p359_p2 = scmp.eq.s32.totalorder %s2804_s25, 1 }
  0x19   : > { %p364_p3 = scmp.ne.s32.totalorder %s2673_s22, %s2669_s21  ;;  %p365_p4 = scmp.eq.s32.totalorder %s3089_s26, 1 }
  0x1a   : > { %s2821_s30 = scalar_select %p346_p1, %s2677_s23, %s348_s28  }
  0x1b   : > { %p2823_p5 = por %p359_p2, %p358_p0  ;;  %p2827_p6 = por %p365_p4, %p364_p3 }
  0x1c   : > { %3115 = sst [smem:[#allocation27_spill]] %s2821_s30  ;;  %p1781_p7 = scmp.ge.s32.totalorder %s2681_s24, 1 }
  0x1d   : > { %s3117_s17 = scalar_select %p2827_p6, 1, 0 }
  0x1e   : > { %p424_p8 = scmp.lt.s32.totalorder %s2681_s24, 3  ;;  %p2288_p9 = scmp.eq.s32.totalorder %s2804_s25, 0 }
  0x1f   : > { %3118 = sst [smem:[#allocation28_spill]] %s3117_s17  ;;  %s2683_s29 = smov [#allocation5]  }
  0x20   : > { %p2834_p10 = pnand %p1781_p7, %p424_p8  ;;  %s3120_s4 = sld [smem:[#allocation33_spill]] }
  0x21   : > { %s454_s26 = sshll.u32 %s2683_s29, 4  ;;  %s3122_s8 = sld [smem:[#allocation34_spill]]  ;;  %s455_s26 = int_to_ptr.vmem [resolvable:$true] %s454_s26 }
  0x22   : > { %p2259_p11 = pneg %p2834_p10  ;;  %s2684_s19 = smov 192  }
  0x23   : > { %s2685_s20 = smov 12   ;;  %s3123_s2 = sld [smem:[#allocation31_spill]] }
  0x24   : > { %p2845_p12 = pnand %p2288_p9, %p2259_p11  ;;  %s2687_s23 = smov [#allocation2]  }
  0x25   : > { %s437_s27 = sshll.u32 %s2687_s23, 4  ;;  %s469_s15 = sshll.u32 %s3078_s6, 4  ;;  %s438_s27 = int_to_ptr.vmem [resolvable:$true] %s437_s27  ;;  %s470_s15 = int_to_ptr.hbm [resolvable:$true] %s469_s15 }
  0x26   : > { %s452_s28 = sshll.u32 %s3120_s4, 4  ;;  %s2686_s4 = smov [#allocation8]   ;;  %s453_s28 = int_to_ptr.hbm [resolvable:$true] %s452_s28 }
  0x27   : > { %s486_s17 = sshll.u32 %s3122_s8, 4  ;;  %s488_s29 = sshll.u32 %s2686_s4, 4  ;;  %s487_s17 = int_to_ptr.hbm [resolvable:$true] %s486_s17  ;;  %s489_s29 = int_to_ptr.vmem [resolvable:$true] %s488_s29 }
  0x28   : > { %2265 = dma.hbm_to_vmem [thread:$0]  (!%p2845_p12), %s453_s28, 3072, %s455_s26, [#allocation6], %s2684_s19, %s2684_s19, %s2685_s20  }
  0x29   : > { %s435_s16 = sshll.u32 %s3123_s2, 4  ;;  %s2688_s26 = smov 64   ;;  %s436_s16 = int_to_ptr.hbm [resolvable:$true] %s435_s16 }
  0x2a   : > { %2271 = dma.hbm_to_vmem [thread:$0]  (!%p2845_p12), %s487_s17, 3072, %s489_s29, [#allocation9], %s2684_s19, %s2684_s19, %s2685_s20  }
  0x2b   : > { %s2689_s28 = smov 4   ;;  %s2690_s4 = smov [#allocation7]  }
  0x2c   : > { %2262 = dma.hbm_to_vmem [thread:$0]  (!%p2845_p12), %s436_s16, 1024, %s438_s27, [#allocation3], %s2688_s26, %s2688_s26, %s2689_s28  }
  0x2d   : > { %s471_s21 = sshll.u32 %s2690_s4, 4  ;;  %s503_s17 = sshll.u32 %s3082_s10, 4  ;;  %s472_s21 = int_to_ptr.vmem [resolvable:$true] %s471_s21  ;;  %s504_s17 = int_to_ptr.hbm [resolvable:$true] %s503_s17 }
  0x2e   : > { %2268 = dma.hbm_to_vmem [thread:$0]  (!%p2845_p12), %s470_s15, 1024, %s472_s21, [#allocation6], %s2688_s26, %s2688_s26, %s2689_s28  }
  0x2f   : > { %s520_s14 = sshll.u32 %s3084_s12, 4  ;;  %s2691_s20 = smov [#allocation10]   ;;  %s521_s14 = int_to_ptr.hbm [resolvable:$true] %s520_s14 }
  0x30   : > { %s505_s29 = sshll.u32 %s2691_s20, 4  ;;  %s2692_s16 = smov [#allocation11]   ;;  %s506_s29 = int_to_ptr.vmem [resolvable:$true] %s505_s29 }
  0x31   : > { %2274 = dma.hbm_to_vmem [thread:$0]  (!%p2845_p12), %s504_s17, 1024, %s506_s29, [#allocation9], %s2688_s26, %s2688_s26, %s2689_s28  }
  0x32   : > { %s522_s23 = sshll.u32 %s2692_s16, 4  ;;  %557 = sbr.rel (%p2834_p10) target bundleno = 1220 (0x4c4), region = 76  ;;  %s523_s23 = int_to_ptr.vmem [resolvable:$true] %s522_s23 }
  0x33   : > { %2277 = dma.hbm_to_vmem [thread:$0]  (!%p2845_p12), %s521_s14, 1024, %s523_s23, [#allocation12], %s2688_s26, %s2688_s26, %s2689_s28  }
  0x37   : > { %2644 = dma.done.wait (%p2288_p9), [#allocation3], 1024  }
  0x38   : > { %2646 = vsyncadd (%p2288_p9), [#allocation3], 4294966272 }
  0x39   : > { %2648 = dma.done.wait (%p2288_p9), [#allocation6], 4096  }
  0x3a   : > { %2650 = vsyncadd (%p2288_p9), [#allocation6], 4294963200 }
  0x3b   : > { %2652 = dma.done.wait (%p2288_p9), [#allocation9], 4096  }
  0x3c   : > { %2654 = vsyncadd (%p2288_p9), [#allocation9], 4294963200 }
  0x3d   : > { %2656 = dma.done.wait (%p2288_p9), [#allocation12], 1024  }
  0x3e   : > { %2658 = vsyncadd (%p2288_p9), [#allocation12], 4294966272  ;;  %v2143_v0 = vld [vmem:[#allocation2 + $0x38] sm:$0xff]  ;;  %v2142_v1 = vld [vmem:[#allocation2 + $0x30] sm:$0xff]  ;;  %p648_p13 = scmp.lt.s32.totalorder %s2804_s25, 1  ;;  %s3124_s1 = sld [smem:[#allocation30_spill]] }
  0x3f   : > { %741 = vmatpush.bf16.msra.mxu0 %v2143_v0  ;;  %v1921_v2 = vld [vmem:[#allocation5 + $0xa8] sm:$0xf]  ;;  %v2166_v3 = vld [vmem:[#allocation5 + $0xb0] sm:$0xf0]  ;;  %v2165_v6 = vld [vmem:[#allocation5 + $0xac] sm:$0xf] }
  0x40   : > { %v2141_v4 = vld [vmem:[#allocation2 + $0x28] sm:$0xff]  ;;  %v1922_v5 = vor.u32 %v2166_v3, %v1921_v2  ;;  %v1923_v7 = vld [vmem:[#allocation5 + $0xb4] sm:$0xf0]  ;;  %v1929_v8 = vld [vmem:[#allocation5 + $0xb0] sm:$0xf]  ;;  %s2898_s2 = scalar_select %p648_p13, %s2804_s25, 1 }
  0x41   : > { %v1926_v9 = vor.u32 %v2165_v6, %v1923_v7  ;;  %v2167_v10 = vld [vmem:[#allocation5 + $0xb8] sm:$0xf0]  ;;  %v1909_v11 = vld [vmem:[#allocation5 + $0x90] sm:$0xf]  ;;  %v2162_v15 = vld [vmem:[#allocation5 + $0x94] sm:$0xf] }
  0x42   : > { %v2163_v12 = vld [vmem:[#allocation5 + $0x98] sm:$0xf0]  ;;  %919 = vmatpush.bf16.msra.mxu1 %v1922_v5  ;;  %v1930_v13 = vor.u32 %v2167_v10, %v1929_v8  ;;  %v1911_v16 = vld [vmem:[#allocation5 + $0x9c] sm:$0xf0]  ;;  %v1917_v17 = vld [vmem:[#allocation5 + $0x98] sm:$0xf] }
  0x43   : > { %742 = vmatpush.bf16.msra.mxu0 %v2142_v1  ;;  %v1910_v14 = vor.u32 %v2163_v12, %v1909_v11  ;;  %933 = vmatpush.bf16.msra.mxu2 %v1926_v9  ;;  %v1914_v18 = vor.u32 %v2162_v15, %v1911_v16  ;;  %v2164_v19 = vld [vmem:[#allocation5 + $0xa0] sm:$0xf0]  ;;  %v1897_v20 = vld [vmem:[#allocation5 + $0x78] sm:$0xf]  ;;  %v2159_v23 = vld [vmem:[#allocation5 + $0x7c] sm:$0xf] }
  0x44   : > { %v2160_v21 = vld [vmem:[#allocation5 + $0x80] sm:$0xf0]  ;;  %947 = vmatpush.bf16.msra.mxu3 %v1930_v13  ;;  %v1918_v22 = vor.u32 %v2164_v19, %v1917_v17  ;;  %v1899_v24 = vld [vmem:[#allocation5 + $0x84] sm:$0xf0]  ;;  %v1905_v25 = vld [vmem:[#allocation5 + $0x80] sm:$0xf] }
  0x45   : > { %v2161_v26 = vld [vmem:[#allocation5 + $0x88] sm:$0xf0]  ;;  %v2140_v27 = vld [vmem:[#allocation2 + $0x20] sm:$0xff]  ;;  %v1898_v28 = vor.u32 %v2160_v21, %v1897_v20  ;;  %v1902_v29 = vor.u32 %v2159_v23, %v1899_v24  ;;  %v2139_v32 = vld [vmem:[#allocation2 + $0x18] sm:$0xff]  ;;  %s2134_s15 = sshll.u32 %s2898_s2, 4  ;;  %s3125_s3 = sld [smem:[#allocation32_spill]] }
  0x46   : > { %920 = vmatpush.bf16.msra.mxu1 %v1910_v14  ;;  %v1885_v30 = vld [vmem:[#allocation5 + $0x60] sm:$0xf]  ;;  %v2157_v31 = vld [vmem:[#allocation5 + $0x68] sm:$0xf0]  ;;  %v1906_v33 = vor.u32 %v2161_v26, %v1905_v25  ;;  %v2156_v34 = vld [vmem:[#allocation5 + $0x64] sm:$0xf]  ;;  %s657_s27 = scalar_lea.vmem %s3124_s1, %s2134_s15 }
  0x47   : > { %743 = vmatpush.bf16.msra.mxu0 %v2141_v4  ;;  %934 = vmatpush.bf16.msra.mxu2 %v1914_v18  ;;  %v1887_v35 = vld [vmem:[#allocation5 + $0x6c] sm:$0xf0]  ;;  %v1893_v36 = vld [vmem:[#allocation5 + $0x68] sm:$0xf]  ;;  %v2158_v37 = vld [vmem:[#allocation5 + $0x70] sm:$0xf0]  ;;  %v1886_v39 = vor.u32 %v2157_v31, %v1885_v30 }
  0x48   : > { %948 = vmatpush.bf16.msra.mxu3 %v1918_v22  ;;  %v1873_v38 = vld [vmem:[#allocation5 + $0x48] sm:$0xf]  ;;  %v1890_v40 = vor.u32 %v2156_v34, %v1887_v35  ;;  %v2154_v41 = vld [vmem:[#allocation5 + $0x50] sm:$0xf0]  ;;  %v1894_v42 = vor.u32 %v2158_v37, %v1893_v36  ;;  %v2153_v43 = vld [vmem:[#allocation5 + $0x4c] sm:$0xf] }
  0x49   : > { %v1875_v44 = vld [vmem:[#allocation5 + $0x54] sm:$0xf0]  ;;  %v1881_v45 = vld [vmem:[#allocation5 + $0x50] sm:$0xf]  ;;  %v2155_v46 = vld [vmem:[#allocation5 + $0x58] sm:$0xf0]  ;;  %v1874_v48 = vor.u32 %v2154_v41, %v1873_v38 }
  0x4a   : > { %921 = vmatpush.bf16.msra.mxu1 %v1898_v28  ;;  %v2138_v47 = vld [vmem:[#allocation2 + $0x10] sm:$0xff]  ;;  %v1878_v49 = vor.u32 %v2153_v43, %v1875_v44  ;;  %v1882_v50 = vor.u32 %v2155_v46, %v1881_v45  ;;  %v2137_v51 = vld [vmem:[#allocation2 + $0x8] sm:$0xff]  ;;  %v2136_v52 = vld [vmem:[#allocation2] sm:$0xff]  ;;  %s3126_s24 = sld [smem:[#allocation29_spill]]  ;;  %v2693_v35 = vmov 0   ;;  %s2216_s20 = sshll.u32 %s2804_s25, 4 }
  0x4b   : > { %744 = vmatpush.bf16.msra.mxu0 %v2140_v27  ;;  %935 = vmatpush.bf16.msra.mxu2 %v1902_v29  ;;  %v670_v53 = vld [vmem:[%s657_s27] sm:$0xff]  ;;  %v671_v54 = vld [vmem:[%s657_s27 + $0x8] sm:$0xff]  ;;  %v1861_v56 = vld [vmem:[#allocation5 + $0x30] sm:$0xf]  ;;  %s3127_s8 = sld [smem:[#allocation36_spill]]  ;;  %s1528_s29 = sand.u32 1, %s2804_s25  }
  0x4c   : > { %949 = vmatpush.bf16.msra.mxu3 %v1906_v33  ;;  %v672_v55 = vpack.c.bf16 %v671_v54, %v670_v53  ;;  %v2151_v57 = vld [vmem:[#allocation5 + $0x38] sm:$0xf0]  ;;  %v2150_v58 = vld [vmem:[#allocation5 + $0x34] sm:$0xf]  ;;  %v1863_v60 = vld [vmem:[#allocation5 + $0x3c] sm:$0xf0]  ;;  %2348 = vset.pattern.permute.xlu0 %v2693_v35 }
  0x4d   : > { %v1862_v59 = vor.u32 %v2151_v57, %v1861_v56  ;;  %v1869_v61 = vld [vmem:[#allocation5 + $0x38] sm:$0xf]  ;;  %v2152_v62 = vld [vmem:[#allocation5 + $0x40] sm:$0xf0]  ;;  %v1866_v63 = vor.u32 %v2150_v58, %v1863_v60  ;;  %v2147_v3 = vld [vmem:[#allocation5 + $0x1c] sm:$0xf]  ;;  %v755_v58 = vlaneseq }
  0x4e   : > { %922 = vmatpush.bf16.msra.mxu1 %v1886_v39  ;;  %v1870_v0 = vor.u32 %v2152_v62, %v1869_v61  ;;  %v1849_v1 = vld [vmem:[#allocation5 + $0x18] sm:$0xf]  ;;  %v2148_v2 = vld [vmem:[#allocation5 + $0x20] sm:$0xf0]  ;;  %v1851_v5 = vld [vmem:[#allocation5 + $0x24] sm:$0xf0] }
  0x4f   : > { %745 = vmatpush.bf16.msra.mxu0 %v2139_v32  ;;  %936 = vmatpush.bf16.msra.mxu2 %v1890_v40  ;;  %v1850_v4 = vor.u32 %v2148_v2, %v1849_v1  ;;  %v1857_v6 = vld [vmem:[#allocation5 + $0x20] sm:$0xf]  ;;  %v2149_v7 = vld [vmem:[#allocation5 + $0x28] sm:$0xf0]  ;;  %v1854_v8 = vor.u32 %v2147_v3, %v1851_v5  ;;  %v2144_v12 = vld [vmem:[#allocation5 + $0x4] sm:$0xf] }
  0x50   : > { %950 = vmatpush.bf16.msra.mxu3 %v1894_v42  ;;  %v1858_v9 = vor.u32 %v2149_v7, %v1857_v6  ;;  %v1837_v10 = vld [vmem:[#allocation5] sm:$0xf]  ;;  %v2145_v11 = vld [vmem:[#allocation5 + $0x8] sm:$0xf0]  ;;  %v1839_v14 = vld [vmem:[#allocation5 + $0xc] sm:$0xf0]  ;;  %s2920_s17 = scalar_lea.vmem %s3126_s24, %s2134_s15 }
  0x51   : > { %v1838_v13 = vor.u32 %v2145_v11, %v1837_v10  ;;  %v1845_v15 = vld [vmem:[#allocation5 + $0x8] sm:$0xf]  ;;  %v2146_v16 = vld [vmem:[#allocation5 + $0x10] sm:$0xf0]  ;;  %v1842_v17 = vor.u32 %v2144_v12, %v1839_v14  ;;  %v2175_v19 = vld [vmem:[#allocation7 + $0x38] sm:$0xff]  ;;  %v2925_v1 = vshrl.u32 %v755_v58, 7 }
  0x52   : > { %923 = vmatpush.bf16.msra.mxu1 %v1874_v48  ;;  %v1846_v18 = vor.u32 %v2146_v16, %v1845_v15  ;;  %v2174_v20 = vld [vmem:[#allocation7 + $0x30] sm:$0xff]  ;;  %v2349_v22 = vld [vmem:[%s3125_s3] ss:$0 sm:$0xff]  ;;  %v2173_v27 = vld [vmem:[#allocation7 + $0x28] sm:$0xff]  ;;  %s2966_s15 = sand.u32 1, %s2673_s22   ;;  %s3101_s24 = sshll.u32 %s2804_s25, 3 }
  0x53   : > { %746 = vmatpush.bf16.msra.mxu0 %v2138_v47  ;;  %937 = vmatpush.bf16.msra.mxu2 %v1878_v49  ;;  %v2172_v28 = vld [vmem:[#allocation7 + $0x20] sm:$0xff]  ;;  %v2171_v29 = vld [vmem:[#allocation7 + $0x18] sm:$0xff]  ;;  %v2170_v30 = vld [vmem:[#allocation7 + $0x10] sm:$0xff]  ;;  %vm971_vm0 = vcmp.lt.s32.totalorder %v2925_v1, 1  ;;  %vm967_vm1 = vcmp.ge.s32.totalorder %v2925_v1, 1  ;;  %vm982_vm2 = vcmp.lt.s32.totalorder %v2925_v1, 7  ;;  %s1562_s14 = scalar_lea.hbm %s3127_s8, %s3101_s24 }
  0x54   : > { %951 = vmatpush.bf16.msra.mxu3 %v1882_v50  ;;  %v2169_v31 = vld [vmem:[#allocation7 + $0x8] sm:$0xff]  ;;  %v2168_v32 = vld [vmem:[#allocation7] sm:$0xff]  ;;  %v2198_v36 = vld [vmem:[#allocation8 + $0xb0] sm:$0xf0]  ;;  %vm1291_vm4 = vcmp.lt.s32.totalorder %v2925_v1, 2  ;;  %vm1287_vm5 = vcmp.ge.s32.totalorder %v2925_v1, 2 }
  0x55   : > { %v658_v33 = vld [vmem:[%s2920_s17] sm:$0xff]  ;;  %v2049_v34 = vld [vmem:[#allocation8 + $0xa8] sm:$0xf]  ;;  %v2197_v37 = vld [vmem:[#allocation8 + $0xac] sm:$0xf]  ;;  %vm1302_vm6 = vcmp.lt.s32.totalorder %v2925_v1, 6 }
  0x56   : > { %924 = vmatpush.bf16.msra.mxu1 %v1862_v59  ;;  %v2051_v38 = vld [vmem:[#allocation8 + $0xb4] sm:$0xf0]  ;;  %662 = vperm.xlu0 %2348, %v658_v33   ;;  %v2050_v39 = vor.u32 %v2198_v36, %v2049_v34  ;;  %v2057_v41 = vld [vmem:[#allocation8 + $0xb0] sm:$0xf]  ;;  %v2199_v42 = vld [vmem:[#allocation8 + $0xb8] sm:$0xf0] }
  0x57   : > { %747 = vmatpush.bf16.msra.mxu0 %v2137_v51  ;;  %938 = vmatpush.bf16.msra.mxu2 %v1866_v63  ;;  %v2054_v40 = vor.u32 %v2197_v37, %v2051_v38  ;;  %v2037_v43 = vld [vmem:[#allocation8 + $0x90] sm:$0xf]  ;;  %v2058_v44 = vor.u32 %v2199_v42, %v2057_v41  ;;  %v2195_v45 = vld [vmem:[#allocation8 + $0x98] sm:$0xf0]  ;;  %v2194_v46 = vld [vmem:[#allocation8 + $0x94] sm:$0xf] }
  0x58   : > { %952 = vmatpush.bf16.msra.mxu3 %v1870_v0  ;;  %v2039_v47 = vld [vmem:[#allocation8 + $0x9c] sm:$0xf0]  ;;  %v2038_v48 = vor.u32 %v2195_v45, %v2037_v43  ;;  %v2045_v50 = vld [vmem:[#allocation8 + $0x98] sm:$0xf]  ;;  %v2196_v51 = vld [vmem:[#allocation8 + $0xa0] sm:$0xf0] }
  0x59   : > { %v2042_v49 = vor.u32 %v2194_v46, %v2039_v47  ;;  %v2046_v53 = vor.u32 %v2196_v51, %v2045_v50  ;;  %v2192_v54 = vld [vmem:[#allocation8 + $0x80] sm:$0xf0]  ;;  %v2027_v56 = vld [vmem:[#allocation8 + $0x84] sm:$0xf0]  ;;  %v2033_v59 = vld [vmem:[#allocation8 + $0x80] sm:$0xf] }
  0x5a   : > { %925 = vmatpush.bf16.msra.mxu1 %v1850_v4  ;;  %v2193_v60 = vld [vmem:[#allocation8 + $0x88] sm:$0xf0]  ;;  %v2350_v7 = vld [vmem:[%s3077_s5] ss:$0 sm:$0xff]  ;;  %v2015_v34 = vld [vmem:[#allocation8 + $0x6c] sm:$0xf0] }
  0x5b   : > { %748 = vmatpush.bf16.msra.mxu0 %v2136_v52  ;;  %939 = vmatpush.bf16.msra.mxu2 %v1854_v8  ;;  %v2025_v52 = vld [vmem:[#allocation8 + $0x78] sm:$0xf]  ;;  %v659_v61 = vld [vmem:[%s2920_s17 + $0x8] sm:$0xff]  ;;  %v2034_v0 = vor.u32 %v2193_v60, %v2033_v59  ;;  %v2190_v36 = vld [vmem:[#allocation8 + $0x70] sm:$0xf0]  ;;  %s3100_s30 = sshll.u32 %s2966_s15, 3 }
  0x5c   : > { %953 = vmatpush.bf16.msra.mxu3 %v1858_v9  ;;  %v2026_v62 = vor.u32 %v2192_v54, %v2025_v52  ;;  %v2933_v9 = vadd.s32 8, %v2925_v1  ;;  %v2021_v35 = vld [vmem:[#allocation8 + $0x68] sm:$0xf]  ;;  %v2185_v41 = vld [vmem:[#allocation8 + $0x4c] sm:$0xf]  ;;  %v2211_v1 = vld [vmem:[#allocation11 + $0x18] sm:$0xff] }
  0x5d   : > { %v2022_v38 = vor.u32 %v2190_v36, %v2021_v35  ;;  %v2003_v43 = vld [vmem:[#allocation8 + $0x54] sm:$0xf0]  ;;  %v2187_v45 = vld [vmem:[#allocation8 + $0x58] sm:$0xf0]  ;;  %v2182_v50 = vld [vmem:[#allocation8 + $0x34] sm:$0xf] }
  0x5e   : > { %749 = vmatmul.bf16.vlgmr.msra.gmra.mxu0 %v672_v55  ;;  %926 = vmatpush.bf16.msra.mxu1 %v1838_v13  ;;  %v2191_v55 = vld [vmem:[#allocation8 + $0x7c] sm:$0xf]  ;;  %vm979_vm3 = vcmp.lt.s32.totalorder %v2933_v9, 15  ;;  %v2006_v46 = vor.u32 %v2185_v41, %v2003_v43  ;;  %v1991_v52 = vld [vmem:[#allocation8 + $0x3c] sm:$0xf0]  ;;  %v2214_v35 = vld [vmem:[#allocation11 + $0x30] sm:$0xff] }
  0x5f   : > { %940 = vmatpush.bf16.msra.mxu2 %v1842_v17  ;;  %1060 = vmatpush.bf16.msrb.mxu0 %v2175_v19  ;;  %v2030_v63 = vor.u32 %v2191_v55, %v2027_v56  ;;  %v2184_v54 = vld [vmem:[#allocation8 + $0x40] sm:$0xf0]  ;;  %v1994_v55 = vor.u32 %v2182_v50, %v1991_v52  ;;  %v2179_v60 = vld [vmem:[#allocation8 + $0x1c] sm:$0xf]  ;;  %v2352_v43 = vld [vmem:[%s3081_s9] ss:$0 sm:$0xff] }
  0x60   : > { %954 = vmatpush.bf16.msra.mxu3 %v1846_v18  ;;  %667 = vperm.xlu0 %2348, %v659_v61   ;;  %v2180_v59 = vld [vmem:[#allocation8 + $0x20] sm:$0xf0]  ;;  %vm1299_vm7 = vcmp.lt.s32.totalorder %v2933_v9, 14  ;;  %v2209_v9 = vld [vmem:[#allocation11 + $0x8] sm:$0xff]  ;;  %s2974_s18 = scalar_lea.vmem [#allocation14], %s3100_s30  ;;  %s1796_s28 = sshll.u32 %s2966_s15, 4 }
  0x61   : > { %s2983_s4 = scalar_lea.vmem [#allocation13], %s1796_s28  ;;  %s1563_s16 = sshll.u32 %s2974_s18, 4  ;;  %s1564_s16 = int_to_ptr.vmem [resolvable:$true] %s1563_s16 }
  0x62   : > { %1239 = vmatpush.bf16.msrb.mxu1 %v2050_v39  ;;  %v2001_v39 = vld [vmem:[#allocation8 + $0x48] sm:$0xf]  ;;  %s1546_s21 = sshll.u32 %s2983_s4, 4  ;;  %s1565_s23 = sshll.u32 %s1562_s14, 4  ;;  %s1566_s23 = int_to_ptr.hbm [resolvable:$true] %s1565_s23  ;;  %s1547_s21 = int_to_ptr.vmem [resolvable:$true] %s1546_s21 }
  0x63   : > { %1061 = vmatpush.bf16.msrb.mxu0 %v2174_v20  ;;  %1253 = vmatpush.bf16.msrb.mxu2 %v2054_v40  ;;  %v2186_v40 = vld [vmem:[#allocation8 + $0x50] sm:$0xf0]  ;;  %s2998_s2 = scalar_lea.sflag [#allocation15], %s1528_s29  ;;  %s2557_s27 = sshra.s32 %s1566_s23, 4  ;;  %s2558_s27 = int_to_ptr.hbm [resolvable:$true] %s2557_s27 }
  0x64   : > { %1267 = vmatpush.bf16.msrb.mxu3 %v2058_v44  ;;  %v2002_v42 = vor.u32 %v2186_v40, %v2001_v39  ;;  %v2009_v44 = vld [vmem:[#allocation8 + $0x50] sm:$0xf]  ;;  %s2559_s26 = scalar_lea.hbm %s2558_s27, 8  ;;  %s2563_s19 = scalar_lea.hbm %s3127_s8, 16 }
  0x65   : > { %v2010_v47 = vor.u32 %v2187_v45, %v2009_v44  ;;  %p2560_p0 = scmp.ne.s32.totalorder %s2558_s27, %s2559_s26  ;;  %p2564_p3 = scmp.lt.s32.totalorder %s2558_s27, %s3127_s8 }
  0x66   : > { %1240 = vmatpush.bf16.msrb.mxu1 %v2038_v48  ;;  %v1989_v48 = vld [vmem:[#allocation8 + $0x30] sm:$0xf]  ;;  %p2565_p4 = scmp.lt.s32.totalorder %s2563_s19, %s2559_s26 }
  0x67   : > { %1062 = vmatpush.bf16.msrb.mxu0 %v2173_v27  ;;  %1254 = vmatpush.bf16.msrb.mxu2 %v2042_v49  ;;  %v2183_v49 = vld [vmem:[#allocation8 + $0x38] sm:$0xf0]  ;;  %p2561_p1 = pnand %p2560_p0, %p2823_p5 }
  0x68   : > { %1268 = vmatpush.bf16.msrb.mxu3 %v2046_v53  ;;  %v1990_v51 = vor.u32 %v2183_v49, %v1989_v48  ;;  %v1997_v53 = vld [vmem:[#allocation8 + $0x38] sm:$0xf]  ;;  %p2566_p7 = por %p2565_p4, %p2564_p3 }
  0x69   : > { %v1998_v56 = vor.u32 %v2184_v54, %v1997_v53  ;;  %p2562_p2 = pneg %p2561_p1 }
  0x6a   : > { %1241 = vmatpush.bf16.msrb.mxu1 %v2026_v62  ;;  %v1979_v62 = vld [vmem:[#allocation8 + $0x24] sm:$0xf0] }
  0x6b   : > { %1063 = vmatpush.bf16.msrb.mxu0 %v2172_v28  ;;  %1255 = vmatpush.bf16.msrb.mxu2 %v2030_v63  ;;  %v1985_v63 = vld [vmem:[#allocation8 + $0x20] sm:$0xf]  ;;  %p2567_p8 = pnand %p2566_p7, %p2562_p2 }
  0x6c   : > { %1269 = vmatpush.bf16.msrb.mxu3 %v2034_v0  ;;  %v2181_v0 = vld [vmem:[#allocation8 + $0x28] sm:$0xf0] }
  0x6f   : > { %1064 = vmatpush.bf16.msrb.mxu0 %v2171_v29 }
  0x70   : > { %1270 = vmatpush.bf16.msrb.mxu3 %v2022_v38 }
  0x73   : > { %1065 = vmatpush.bf16.msrb.mxu0 %v2170_v30  ;;  %v2013_v30 = vld [vmem:[#allocation8 + $0x60] sm:$0xf] }
  0x74   : > { %1271 = vmatpush.bf16.msrb.mxu3 %v2010_v47 }
  0x77   : > { %1066 = vmatpush.bf16.msrb.mxu0 %v2169_v31  ;;  %v2189_v31 = vld [vmem:[#allocation8 + $0x68] sm:$0xf0] }
  0x78   : > { %v2014_v33 = vor.u32 %v2189_v31, %v2013_v30  ;;  %1272 = vmatpush.bf16.msrb.mxu3 %v1998_v56  ;;  %v2205_v30 = vld [vmem:[#allocation10 + $0x28] sm:$0xff]  ;;  %v2203_v31 = vld [vmem:[#allocation10 + $0x18] sm:$0xff] }
  0x7a   : > { %1242 = vmatpush.bf16.msrb.mxu1 %v2014_v33  ;;  %v2200_v33 = vld [vmem:[#allocation10] sm:$0xff] }
  0x7b   : > { %1067 = vmatpush.bf16.msrb.mxu0 %v2168_v32  ;;  %v2188_v32 = vld [vmem:[#allocation8 + $0x64] sm:$0xf] }
  0x7c   : > { %v2018_v37 = vor.u32 %v2188_v32, %v2015_v34  ;;  %v2201_v32 = vld [vmem:[#allocation10 + $0x8] sm:$0xff]  ;;  %v2215_v34 = vld [vmem:[#allocation11 + $0x38] sm:$0xff] }
  0x7e   : > { %1256 = vmatpush.bf16.msrb.mxu2 %v2018_v37  ;;  %1243 = vmatpush.bf16.msrb.mxu1 %v2002_v42  ;;  %v2213_v37 = vld [vmem:[#allocation11 + $0x28] sm:$0xff] }
  0x82   : > { %1257 = vmatpush.bf16.msrb.mxu2 %v2006_v46  ;;  %1244 = vmatpush.bf16.msrb.mxu1 %v1990_v51 }
  0x86   : > { %1258 = vmatpush.bf16.msrb.mxu2 %v1994_v55 }
  0xdb   : > { %v750_v21 = vpop.f32.mrf.mxu0 }
  0xdc   : > { %v2909_v24 = vadd.f32 %v2349_v22, %v750_v21 }
  0xe3   : > { %v752_v23 = vpop.f32.mrf.mxu0 }
  0xe4   : > { %v2911_v25 = vadd.f32 %v2349_v22, %v752_v23 }
  0xe6   : > { %v758_v26 = vpack.c.bf16 %v2911_v25, %v2909_v24 }
  0xe8   : > { %927 = vmatmul.bf16.vlgmr.msra.gmra.mxu1 %v758_v26  ;;  %941 = vmatmul.bf16.vlgmr.msra.gmra.mxu2 %v758_v26 }
  0xe9   : > { %955 = vmatmul.bf16.vlgmr.msra.gmra.mxu3 %v758_v26 }
 0x165   : > { %v928_v57 = vpop.f32.mrf.mxu1 }
 0x166   : > { %v969_v5 = vrot.slane %v928_v57, 7  ;;  %v1977_v57 = vld [vmem:[#allocation8 + $0x18] sm:$0xf] }
 0x167   : > { %v1978_v61 = vor.u32 %v2180_v59, %v1977_v57 }
 0x169   : > { %1245 = vmatpush.bf16.msrb.mxu1 %v1978_v61 }
 0x16b   : > { %v942_v2 = vpop.f32.mrf.mxu2 }
 0x16c   : > { %v956_v3 = vpop.f32.mrf.mxu3  ;;  %v965_v12 = vadd.f32 %v2350_v7, %v942_v2  ;;  %v1982_v2 = vor.u32 %v2179_v60, %v1979_v62 }
 0x16d   : > { %v930_v4 = vpop.f32.mrf.mxu1  ;;  %v980_v15 = vrot.slane %v956_v3, 1  ;;  %v1986_v3 = vor.u32 %v2181_v0, %v1985_v63  ;;  %v2212_v0 = vld [vmem:[#allocation11 + $0x20] sm:$0xff] }
 0x16e   : > { %v970_v6 = vrot.slane %v930_v4, 7  ;;  %1259 = vmatpush.bf16.msrb.mxu2 %v1982_v2  ;;  %v1965_v4 = vld [vmem:[#allocation8] sm:$0xf]  ;;  %v2210_v2 = vld [vmem:[#allocation11 + $0x10] sm:$0xff] }
 0x16f   : > { %1273 = vmatpush.bf16.msrb.mxu3 %v1986_v3  ;;  %v2208_v3 = vld [vmem:[#allocation11] sm:$0xff] }
 0x170   : > { %v973_v8 = vsel %vm971_vm0, %v970_v6, %v969_v5  ;;  %v972_v16 = vsel %vm971_vm0, %v969_v5, %v970_v6  ;;  %v2177_v5 = vld [vmem:[#allocation8 + $0x8] sm:$0xf0]  ;;  %v2176_v6 = vld [vmem:[#allocation8 + $0x4] sm:$0xf] }
 0x171   : > { %v974_v10 = vsel %vm967_vm1, %v973_v8, 0.0  ;;  %v1967_v8 = vld [vmem:[#allocation8 + $0xc] sm:$0xf0] }
 0x172   : > { %v976_v18 = vadd.f32 %v974_v10, %v965_v12  ;;  %v1973_v10 = vld [vmem:[#allocation8 + $0x8] sm:$0xf]  ;;  %v1970_v12 = vor.u32 %v2176_v6, %v1967_v8 }
 0x173   : > { %v944_v11 = vpop.f32.mrf.mxu2 }
 0x174   : > { %v966_v13 = vadd.f32 %v2350_v7, %v944_v11  ;;  %v958_v14 = vpop.f32.mrf.mxu3  ;;  %v1966_v7 = vor.u32 %v2177_v5, %v1965_v4  ;;  %v2178_v11 = vld [vmem:[#allocation8 + $0x10] sm:$0xf0]  ;;  %1260 = vmatpush.bf16.msrb.mxu2 %v1970_v12  ;;  %v2353_v4 = vld [vmem:[%s3083_s11] ss:$0 sm:$0xff] }
 0x175   : > { %v981_v17 = vrot.slane %v958_v14, 1  ;;  %v2207_v14 = vld [vmem:[#allocation10 + $0x38] sm:$0xff] }
 0x176   : > { %v977_v19 = vadd.f32 %v972_v16, %v966_v13  ;;  %v1974_v13 = vor.u32 %v2178_v11, %v1973_v10  ;;  %1246 = vmatpush.bf16.msrb.mxu1 %v1966_v7  ;;  %1380 = vmatpush.bf16.msra.mxu0 %v2207_v14 }
 0x177   : > { %v983_v20 = vsel %vm982_vm2, %v980_v15, %v981_v17  ;;  %v984_v21 = vsel %vm982_vm2, %v981_v17, %v980_v15  ;;  %v2206_v15 = vld [vmem:[#allocation10 + $0x30] sm:$0xff]  ;;  %v2351_v17 = vld [vmem:[%s3079_s7] ss:$0 sm:$0xff] }
 0x178   : > { %v986_v22 = vsel %vm979_vm3, %v984_v21, 0.0  ;;  %v987_v23 = vadd.f32 %v983_v20, %v976_v18  ;;  %1274 = vmatpush.bf16.msrb.mxu3 %v1974_v13  ;;  %v2940_v18 = vpop.permute.xlu0 %662 }
 0x179   : > { %v988_v26 = vadd.f32 %v986_v22, %v977_v19 }
 0x17a   : > { %v989_v27 = vmax.f32 %v987_v23, 0.0  ;;  %1381 = vmatpush.bf16.msra.mxu0 %v2206_v15  ;;  %1476 = vmatpush.bf16.msra.mxu1 %v2215_v34 }
 0x17b   : > { %v990_v28 = vmax.f32 %v988_v26, 0.0 }
 0x17d   : > { %v991_v29 = vpack.c.bf16 %v990_v28, %v989_v27 }
 0x17e   : > { %1382 = vmatpush.bf16.msra.mxu0 %v2205_v30  ;;  %1477 = vmatpush.bf16.msra.mxu1 %v2214_v35 }
 0x17f   : > { %1068 = vmatmul.bf16.vlgmr.msrb.gmra.mxu0 %v991_v29 }
 0x180   : > { %v2944_v26 = vpop.permute.xlu0 %667 }
 0x182   : > { %1478 = vmatpush.bf16.msra.mxu1 %v2213_v37 }
 0x186   : > { %1479 = vmatpush.bf16.msra.mxu1 %v2212_v0 }
 0x18a   : > { %1480 = vmatpush.bf16.msra.mxu1 %v2211_v1 }
 0x18e   : > { %1481 = vmatpush.bf16.msra.mxu1 %v2210_v2 }
 0x192   : > { %1482 = vmatpush.bf16.msra.mxu1 %v2209_v9 }
 0x196   : > { %1483 = vmatpush.bf16.msra.mxu1 %v2208_v3 }
 0x1fc   : > { %v1069_v16 = vpop.f32.mrf.mxu0 }
 0x1fd   : > { %v1070_v19 = vadd.f32 %v2351_v17, %v1069_v16 }
 0x1ff   : > { %v1074_v21 = vadd.f32 %v1070_v19, %v2909_v24  ;;  %v2204_v24 = vld [vmem:[#allocation10 + $0x20] sm:$0xff] }
 0x200   : > { %1383 = vmatpush.bf16.msra.mxu0 %v2204_v24 }
 0x201   : > { %v2947_v27 = vmul.f32 %v1074_v21, %v2940_v18  ;;  %v2354_v21 = vld [vmem:[%s3085_s13] ss:$0 sm:$0xff] }
 0x204   : > { %v1071_v20 = vpop.f32.mrf.mxu0  ;;  %1384 = vmatpush.bf16.msra.mxu0 %v2203_v31 }
 0x205   : > { %v1072_v22 = vadd.f32 %v2351_v17, %v1071_v20 }
 0x207   : > { %v1075_v23 = vadd.f32 %v1072_v22, %v2911_v25  ;;  %v2202_v25 = vld [vmem:[#allocation10 + $0x10] sm:$0xff]  ;;  %v1495_v22 = vand.u32 127, %v755_v58 }
 0x208   : > { %1385 = vmatpush.bf16.msra.mxu0 %v2202_v25 }
 0x209   : > { %v2950_v28 = vmul.f32 %v1075_v23, %v2944_v26  ;;  %vm1496_vm8 = vcmp.lt.s32.totalorder %v1495_v22, 8 }
 0x20b   : > { %v1078_v29 = vpack.c.bf16 %v2950_v28, %v2947_v27 }
 0x20c   : > { %1386 = vmatpush.bf16.msra.mxu0 %v2201_v32 }
 0x20d   : > { %1247 = vmatmul.bf16.vlgmr.msrb.gmra.mxu1 %v1078_v29  ;;  %1261 = vmatmul.bf16.vlgmr.msrb.gmra.mxu2 %v1078_v29 }
 0x20e   : > { %1275 = vmatmul.bf16.vlgmr.msrb.gmra.mxu3 %v1078_v29 }
 0x210   : > { %1387 = vmatpush.bf16.msra.mxu0 %v2200_v33 }
 0x28a   : > { %v1248_v36 = vpop.f32.mrf.mxu1 }
 0x28b   : > { %v1289_v41 = vrot.slane %v1248_v36, 6 }
 0x290   : > { %v1262_v38 = vpop.f32.mrf.mxu2 }
 0x291   : > { %v1276_v39 = vpop.f32.mrf.mxu3  ;;  %v1285_v47 = vadd.f32 %v2352_v43, %v1262_v38 }
 0x292   : > { %v1250_v40 = vpop.f32.mrf.mxu1  ;;  %v1300_v50 = vrot.slane %v1276_v39, 2 }
 0x293   : > { %v1290_v42 = vrot.slane %v1250_v40, 6 }
 0x295   : > { %v1293_v44 = vsel %vm1291_vm4, %v1290_v42, %v1289_v41  ;;  %v1292_v51 = vsel %vm1291_vm4, %v1289_v41, %v1290_v42 }
 0x296   : > { %v1294_v45 = vsel %vm1287_vm5, %v1293_v44, 0.0 }
 0x297   : > { %v1296_v53 = vadd.f32 %v1294_v45, %v1285_v47 }
 0x298   : > { %v1264_v46 = vpop.f32.mrf.mxu2 }
 0x299   : > { %v1286_v48 = vadd.f32 %v2352_v43, %v1264_v46  ;;  %v1278_v49 = vpop.f32.mrf.mxu3 }
 0x29a   : > { %v1301_v52 = vrot.slane %v1278_v49, 2 }
 0x29b   : > { %v1297_v54 = vadd.f32 %v1292_v51, %v1286_v48 }
 0x29c   : > { %v1303_v55 = vsel %vm1302_vm6, %v1300_v50, %v1301_v52  ;;  %v1304_v56 = vsel %vm1302_vm6, %v1301_v52, %v1300_v50 }
 0x29d   : > { %v1306_v57 = vsel %vm1299_vm7, %v1304_v56, 0.0  ;;  %v1307_v59 = vadd.f32 %v1303_v55, %v1296_v53 }
 0x29e   : > { %v1308_v60 = vadd.f32 %v1306_v57, %v1297_v54 }
 0x29f   : > { %v1309_v61 = vmax.f32 %v1307_v59, 0.0 }
 0x2a0   : > { %v1310_v62 = vmax.f32 %v1308_v60, 0.0 }
 0x2a2   : > { %v1311_v63 = vpack.c.bf16 %v1310_v62, %v1309_v61 }
 0x2a4   : > { %1388 = vmatmul.bf16.vlgmr.msra.gmra.mxu0 %v1311_v63 }
 0x321   : > { %v1389_v5 = vpop.f32.mrf.mxu0 }
 0x322   : > { %v1390_v6 = vadd.f32 %v2353_v4, %v1389_v5 }
 0x324   : > { %v1394_v7 = vadd.f32 %v1390_v6, %v2947_v27 }
 0x326   : > { %v1396_v10 = vmul.f32 %v1394_v7, %v2940_v18 }
 0x328   : > { %v1398_v13 = vpack.c.bf16 %v1396_v10, %v1396_v10 }
 0x329   : > { %v1391_v8 = vpop.f32.mrf.mxu0 }
 0x32a   : > { %v1392_v11 = vadd.f32 %v2353_v4, %v1391_v8  ;;  %v1424_v17 = vunpack.c.l.b16 %v1398_v13 }
 0x32c   : > { %v1395_v12 = vadd.f32 %v1392_v11, %v2950_v28 }
 0x32e   : > { %v1397_v14 = vmul.f32 %v1395_v12, %v2944_v26 }
 0x330   : > { %v1399_v15 = vpack.c.bf16 %v1397_v14, %v1397_v14  ;;  %v2222_v16 = vpack.c.bf16 %v1397_v14, %v1396_v10 }
 0x332   : > { %2223 = vst [vmem:[%s2974_s18] sm:$0xff] %v2222_v16   ;;  %v1425_v19 = vunpack.c.l.b16 %v1399_v15 }
 0x334   : > { %v1426_v20 = vpack.c.b16 %v1425_v19, %v1424_v17 }
 0x336   : > { %1484 = vmatmul.bf16.vlgmr.msra.gmra.mxu1 %v1426_v20 }
 0x3b3   : > { %v1485_v23 = vpop.f32.mrf.mxu1 }
 0x3b4   : > { %v1486_v27 = vadd.f32 %v2354_v21, %v1485_v23 }
 0x3b6   : > { %v1490_v28 = vmul.f32 %v1486_v27, %v2940_v18 }
 0x3b8   : > { %v1497_v29 = vsel %vm1496_vm8, %v1490_v28, -1e+30  ;;  %1492 = vst [vmem:[%s2983_s4] sm:$0xff] %v1490_v28 }
 0x3b9   : > { %1499 = vmax.xlane.f32.xlu1 %v1497_v29 }
 0x3bb   : > { %v1487_v30 = vpop.f32.mrf.mxu1 }
 0x3bc   : > { %v1488_v24 = vadd.f32 %v2354_v21, %v1487_v30 }
 0x3be   : > { %v1491_v31 = vmul.f32 %v1488_v24, %v2944_v26 }
 0x3c0   : > { %1493 = vst [vmem:[%s2983_s4 + $0x8] sm:$0xff] %v1491_v31  ;;  %v1498_v58 = vsel %vm1496_vm8, %v1491_v31, -1e+30 }
 0x3c1   : > { %1501 = vmax.xlane.f32.xlu1 %v1498_v58 }
 0x42c   : > { %v1500_v25 = vpop.xlane.xlu1 %1499 }
 0x42d   : > { %v1503_v32 = vsub.f32 %v1497_v29, %v1500_v25 }
 0x42f   : > { %v1505_v33 = vmul.f32 1.442695, %v1503_v32 }
 0x431   : > { %2355 = vpow2.f32 %v1505_v33 }
 0x434   : > { %v1502_v34 = vpop.xlane.xlu1 %1501 }
 0x435   : > { %v1504_v35 = vsub.f32 %v1498_v58, %v1502_v34 }
 0x437   : > { %v2356_v36 = vpop.eup %2355  ;;  %v1507_v37 = vmul.f32 1.442695, %v1504_v35 }
 0x438   : > { %1509 = vadd.xlane.f32.xlu2 %v2356_v36 }
 0x439   : > { %2357 = vpow2.f32 %v1507_v37 }
 0x43f   : > { %v2358_v38 = vpop.eup %2357 }
 0x440   : > { %1511 = vadd.xlane.f32.xlu2 %v2358_v38 }
 0x441   : > { %2570 = shalt.err (!%p2567_p8)
}
 0x442   : > { %s2694_s18 = smov 64   ;;  %s2695_s14 = smov 4  }
 0x443   : > { %2254 = dma.vmem_to_hbm [thread:$0]  (%p2823_p5), %s1564_s16, 128, %s1566_s23, %s2998_s2, %s2694_s18, %s2694_s18, %s2695_s14  }
 0x444   : > { %s3128_s29 = sld [smem:[#allocation35_spill]]  ;;  %s1524_s28 = scalar_lea.sflag [#allocation4], %s2966_s15 }
 0x44a   : > { %s1545_s27 = scalar_lea.hbm %s3128_s29, %s2216_s20  ;;  %s2591_s16 = scalar_lea.hbm %s3128_s29, 32 }
 0x44b   : > { %s1548_s26 = sshll.u32 %s1545_s27, 4  ;;  %s1549_s26 = int_to_ptr.hbm [resolvable:$true] %s1548_s26 }
 0x44c   : > { %s2585_s17 = sshra.s32 %s1549_s26, 4  ;;  %s2586_s17 = int_to_ptr.hbm [resolvable:$true] %s2585_s17 }
 0x44d   : > { %s2587_s19 = scalar_lea.hbm %s2586_s17, 16  ;;  %p2592_p12 = scmp.lt.s32.totalorder %s2586_s17, %s3128_s29 }
 0x44e   : > { %p2588_p9 = scmp.ne.s32.totalorder %s2586_s17, %s2587_s19  ;;  %p2593_p13 = scmp.lt.s32.totalorder %s2591_s16, %s2587_s19 }
 0x450   : > { %p2589_p10 = pnand %p2588_p9, %p2823_p5  ;;  %p2594_p0 = por %p2593_p13, %p2592_p12 }
 0x452   : > { %p2590_p11 = pneg %p2589_p10 }
 0x454   : > { %p2595_p1 = pnand %p2594_p0, %p2590_p11 }
 0x456   : > { %2598 = shalt.err (!%p2595_p1)
}
 0x457   : > { %s2696_s20 = smov 128   ;;  %s2697_s30 = smov 8  }
 0x458   : > { %2253 = dma.vmem_to_hbm [thread:$0]  (%p2823_p5), %s1547_s21, 256, %s1549_s26, %s1524_s28, %s2696_s20, %s2696_s20, %s2697_s30  }
 0x459   : > { %s3129_s1 = sshll.u32 %s2804_s25, 3  ;;  %s3130_s27 = sld [smem:[#allocation37_spill]] }
 0x45a   : > { %s3131_s16 = sshll.u32 %s2966_s15, 3 }
 0x45b   : > { %s647_s4 = scalar_lea.vmem [#allocation16], %s3131_s16 }
 0x45c   : > { %s1580_s23 = sshll.u32 %s647_s4, 4  ;;  %s1581_s23 = int_to_ptr.vmem [resolvable:$true] %s1580_s23 }
 0x45f   : > { %s1579_s17 = scalar_lea.hbm %s3130_s27, %s3129_s1  ;;  %s2619_s15 = scalar_lea.hbm %s3130_s27, 16 }
 0x460   : > { %s1582_s19 = sshll.u32 %s1579_s17, 4  ;;  %s1583_s19 = int_to_ptr.hbm [resolvable:$true] %s1582_s19 }
 0x461   : > { %s2613_s25 = sshra.s32 %s1583_s19, 4  ;;  %s2614_s25 = int_to_ptr.hbm [resolvable:$true] %s2613_s25 }
 0x462   : > { %s2615_s21 = scalar_lea.hbm %s2614_s25, 8  ;;  %p2620_p7 = scmp.lt.s32.totalorder %s2614_s25, %s3130_s27 }
 0x463   : > { %p2616_p2 = scmp.ne.s32.totalorder %s2614_s25, %s2615_s21  ;;  %p2621_p8 = scmp.lt.s32.totalorder %s2619_s15, %s2615_s21 }
 0x465   : > { %p2617_p3 = pnand %p2616_p2, %p2823_p5  ;;  %p2622_p9 = por %p2621_p8, %p2620_p7 }
 0x467   : > { %p2618_p4 = pneg %p2617_p3 }
 0x469   : > { %p2623_p10 = pnand %p2622_p9, %p2618_p4 }
 0x4ab   : > { %v1510_v39 = vpop.xlane.xlu2 %1509 }
 0x4ac   : > { %2359 = vrcp.f32 %v1510_v39 }
 0x4b2   : > { %v2360_v41 = vpop.eup %2359 }
 0x4b3   : > { %v1512_v40 = vpop.xlane.xlu2 %1511  ;;  %v1515_v42 = vmul.f32 %v2360_v41, %v2356_v36 }
 0x4b4   : > { %2361 = vrcp.f32 %v1512_v40 }
 0x4b5   : > { %v1517_v45 = vmul.f32 %v1515_v42, %v2940_v18 }
 0x4ba   : > { %v2362_v43 = vpop.eup %2361 }
 0x4bb   : > { %v1516_v44 = vmul.f32 %v2362_v43, %v2358_v38 }
 0x4bd   : > { %v1518_v46 = vmul.f32 %v1516_v44, %v2944_v26 }
 0x4bf   : > { %v2227_v47 = vpack.c.bf16 %v1518_v46, %v1517_v45 }
 0x4c1   : > { %2228 = vst [vmem:[%s647_s4] sm:$0xff] %v2227_v47  }
 0x4c2   : > { %2626 = shalt.err (!%p2623_p10)
}
 0x4c3   : > { %2255 = dma.vmem_to_hbm [thread:$0]  (%p2823_p5), %s1581_s23, 128, %s1583_s19, %s2998_s2, %s2694_s18, %s2694_s18, %s2695_s14  }
 0x4c4 PF: > { %s3132_s1 = sld [smem:[#allocation25_spill]] }
 0x4c5   : > { %s3133_s3 = sld [smem:[#allocation23_spill]] }
 0x4ca   : > { %p2300_p11 = scmp.ge.s32.totalorder %s3132_s1, 2 }
 0x4cb   : > { %s1597_s17 = sand.u32 1, %s3133_s3  }
 0x4cc   : > { %p2279_p12 = pnand %p2300_p11, %p2827_p6  ;;  %s1598_s16 = scalar_lea.sflag [#allocation4], %s1597_s17 }
 0x4ce   : > { %p2280_p13 = pneg %p2279_p12 }
 0x4d0   : > { %2660 = dma.done.wait (%p2280_p13), %s1598_s16, 256  }
 0x4d1   : > { %2662 = vsyncadd (%p2280_p13), %s1598_s16, 4294967040  ;;  %s3135_s4 = sadd.s32 4294967294, %s3132_s1  }
 0x4d2   : > { %s1607_s0 = sand.u32 1, %s3135_s4  }
 0x4d3   : > { %s1608_s25 = scalar_lea.sflag [#allocation15], %s1607_s0 }
 0x4d4   : > { %2664 = dma.done.wait (%p2280_p13), %s1608_s25, 256  }
 0x4d5   : > { %2666 = vsyncadd (%p2280_p13), %s1608_s25, 4294967040  ;;  %s3136_s24 = sld [smem:[#allocation26_spill]]  ;;  %s3139_s21 = smov %s2673_s22 }
 0x4d6   : > { %s3137_s2 = sld [smem:[#allocation24_spill]] }
 0x4d7   : > { %s3138_s23 = sld [smem:[#allocation27_spill]] }
 0x4db   : > { %p34_p5 = scmp.ge.s32.totalorder %s3136_s24, 4  }
 0x4dc   : > { %s3140_s22 = smov %s3137_s2 }
 0x4dd   :  { %36 = sbr.rel (!%p34_p5) target bundleno = 19 (0x13), region = 171 }
 0x4e2   :  { %1624 = vsyncpa [#allocation3], 1 }
 0x4e3   :  { %1626 = vsyncpa [#allocation3 + $0x1], 1 }
 0x4e4   :  { %1627 = vsyncpa [#allocation6], 1 }
 0x4e5   :  { %1628 = vsyncpa [#allocation9], 1 }
 0x4e6   :  { %1629 = vsyncpa [#allocation12], 1 }
 0x4e7   :  { %1630 = vsyncpa [#allocation4], 1 }
 0x4e8   :  { %1632 = vsyncpa [#allocation4 + $0x1], 1 }
 0x4e9   :  { %1633 = vsyncpa [#allocation15], 1 }
 0x4ea   :  { %1635 = vsyncpa [#allocation15 + $0x1], 1 }

</bundles_post_ra>
